<compile_context>
chip_gen: v7x
topology: tpu7x:2x2x1
jax: 0.10.0
libtpu: 0.0.40
codegen_flags: <defaults>
</compile_context>

<pallas_src>
import functools

import jax
import jax.numpy as jnp
from jax.experimental import pallas as pl
from jax.experimental.pallas import tpu as pltpu


def _fusion_attn_kernel(qp_ref, kp_ref, xv_ref, bias_ref, va_ref,
                        o_ref,
                        m_ref, l_ref, acc_ref,
                        *, compute_dtype, keys_on_lanes):
    # qp_ref  : (bt, tq, D)             hoisted query projection (compute_dtype)
    # kp_ref  : (bt, D, tk) if keys_on_lanes else (bt, tk, D)   key projection
    # xv_ref  : (bt, tk, D)             values (= x)
    # bias_ref: (1|bt, tq, tk) bf16     additive mask (-1e30 masked, 0 visible)
    # va_ref  : (1, D) f32              Va weight (bias dropped: softmax is
    #                                   shift-invariant)
    # scratch : m/l (bt,tq,1), acc (bt,tq,D), f32, resident across the key axis
    k_idx = pl.program_id(2)

    @pl.when(k_idx == 0)
    def _init():
        m_ref[...] = jnp.full(m_ref.shape, -jnp.inf, jnp.float32)
        l_ref[...] = jnp.zeros(l_ref.shape, jnp.float32)
        acc_ref[...] = jnp.zeros(acc_ref.shape, jnp.float32)

    xv = xv_ref[...]                                    # (bt, tk, D)
    bias = bias_ref[...].astype(jnp.float32)            # (1|bt, tq, tk)

    if keys_on_lanes:
        # D < 128: keep TK on the lane axis so every VPU/EUP op runs at full
        # lane occupancy, and accumulate the Va contraction on the VPU over D
        # (no XLU lane-reduce).  The per-d chain stays vreg-resident.
        qp = qp_ref[...].astype(compute_dtype)          # (bt, tq, D)
        kpT = kp_ref[...].astype(compute_dtype)         # (bt, D, tk)
        va = va_ref[...]                                 # (1, D) f32
        bt, tq, d_model = qp.shape
        tk = kpT.shape[-1]
        s = jnp.zeros((bt, tq, tk), jnp.float32)
        for d in range(d_model):                         # unrolled, d_model < 128
            e = jnp.tanh(qp[:, :, d:d + 1] + kpT[:, d:d + 1, :])   # (bt,tq,tk)
            s = s + e.astype(jnp.float32) * va[0:1, d:d + 1]
    else:
        # D >= 128: lanes are already full with D; one 4-D tanh tile per step.
        qp = qp_ref[...].astype(compute_dtype)           # (bt, tq, D)
        kp = kp_ref[...].astype(compute_dtype)           # (bt, tk, D)
        va = va_ref[0].astype(compute_dtype)             # (D,)
        a = jnp.tanh(qp[:, :, None, :] + kp[:, None, :, :])        # (bt,tq,tk,D)
        # TODO(synk): if a bundle dump shows the XLU lane-reduce saturating the
        # vector-extended slot, move this contraction to the (otherwise idle)
        # MXU via a (bt*tq*tk, D) @ (D, 128) matmul.
        s = jnp.sum(a * va, axis=-1, dtype=jnp.float32)             # (bt,tq,tk)

    # TODO(synk): nn.Dropout on tanh(.) and on the softmax weights omitted
    # (module in eval mode => identity).
    s = s + bias                                          # masked energies

    # Online (flash-style) softmax update across key tiles.
    m_prev = m_ref[...]
    m_new = jnp.maximum(m_prev, jnp.max(s, axis=-1, keepdims=True))
    alpha = jnp.exp(m_prev - m_new)
    p = jnp.exp(s - m_new)                                # (bt,tq,tk)
    l_ref[...] = alpha * l_ref[...] + jnp.sum(p, axis=-1, keepdims=True)
    acc_ref[...] = alpha * acc_ref[...] + jnp.einsum(
        'btk,bkd->btd', p.astype(xv.dtype), xv,
        preferred_element_type=jnp.float32)
    m_ref[...] = m_new

    @pl.when(k_idx == pl.num_programs(2) - 1)
    def _finalize():
        l = l_ref[...]
        r = pl.reciprocal(l, approx=True)   # EUP vrcp (spare bundle slot)
        r = r * (2.0 - l * r)               # one Newton step -> ~f32 exact
        o_ref[...] = (acc_ref[...] * r).astype(o_ref.dtype)


def _largest_divisor(n, cap):
    t = max(1, min(n, cap))
    while n % t:
        t -= 1
    return t


def _device_kind():
    try:
        return jax.devices()[0].device_kind.lower()
    except Exception:
        return ""


def _vmem_capacity_bytes(kind):
    try:
        cap = int(pltpu.get_tpu_info().vmem_capacity_bytes)
        if cap > 0:
            return cap
    except Exception:
        pass
    # v7x has 64 MiB per TensorCore; v5e/v6e have 128 MiB.
    return (64 << 20) if "v7" in kind else (128 << 20)


def fusion_self_attention(x, mask, wa, ba, ua, bu, va, bva=None, *,
                          tq=None, tk=None, bt=None,
                          compute_dtype=None, keys_on_lanes=None):
    """softmax(Va . tanh(Wa q + Ua k) + mask_bias) @ v with q = k = v = x.

    x:    (B, T, D) activations.
    mask: (T, T) shared or (B, T, T) per-batch; 0 => masked.
    wa/ua: (D, D) PyTorch nn.Linear weights (out, in); ba/bu: (D,).
    va:   (1, D) Va weight. bva is accepted for API parity but unused
          (softmax is shift-invariant so the Va bias cannot affect the output).
    Note: fully-masked rows get a *uniform* softmax (finite -1e30 bias) instead
    of the reference's NaN from -inf.
    """
    del bva  # shift-invariance of softmax: bVa never changes the result.
    B, T, D = x.shape
    kind = _device_kind()
    if compute_dtype is None:
        # bf16 energy tile where the VPU/EUP have bf16 paths (v6e/v7x); f32 else.
        compute_dtype = (jnp.bfloat16 if ("v6" in kind or "v7" in kind)
                         else jnp.float32)
    if keys_on_lanes is None:
        keys_on_lanes = D < 128
    two_tc = "v7" in kind
    vmem_cap = _vmem_capacity_bytes(kind)

    # ---- projections hoisted out of the kernel (one-time XLA matmuls) -------
    # In-kernel, kp would be recomputed once per *query* tile; hoisting removes
    # that nq-fold redundancy for ~2*B*T*D extra HBM reads.
    qp = (x @ wa.T + ba).astype(compute_dtype)            # (B, T, D)
    kp = (x @ ua.T + bu).astype(compute_dtype)            # (B, T, D)
    kp_in = jnp.swapaxes(kp, 1, 2) if keys_on_lanes else kp   # (B, D, T) lane-dense keys
    va2 = va.reshape(1, D).astype(jnp.float32)

    # ---- additive mask bias, shipped as bf16 (halves mask DMA) --------------
    bias = jnp.where(mask == 0, jnp.float32(-1e30),
                     jnp.float32(0.0)).astype(jnp.bfloat16)
    per_batch_bias = bias.ndim == 3
    if not per_batch_bias:
        bias = bias[None]                                  # (1, T, T) shared

    # ---- tiling (generation-aware VMEM budget) -------------------------------
    tq_auto, tk_auto, bt_auto = tq is None, tk is None, bt is None
    tq = tq if tq is not None else _largest_divisor(T, 128)
    tk = tk if tk is not None else _largest_divisor(T, 128)
    if bt is None:
        # Fold batch elements into one grid step when per-step work is tiny,
        # but on v7x keep >= 2 "parallel" steps so both TensorCores get work.
        bt = B if (T <= 128 and D <= 128) else 1
        if two_tc and B >= 2 and (T // tq) == 1:
            bt = max(1, B // 2)
    bt = max(1, min(bt, B))
    while B % bt:
        bt -= 1

    x_it = jnp.dtype(x.dtype).itemsize
    c_it = jnp.dtype(compute_dtype).itemsize

    def _vmem_estimate(bt_, tq_, tk_):
        mb_ = bt_ if per_batch_bias else 1
        blocks = 2 * (bt_ * tq_ * D * c_it        # qp blocks (double-buffered)
                      + bt_ * tk_ * D * c_it      # kp / kpT blocks
                      + bt_ * tk_ * D * x_it      # value blocks
                      + mb_ * tq_ * tk_ * 2       # mask-bias blocks (bf16)
                      + 8 * 128 * 4)              # Va (padded)
        blocks += 2 * bt_ * tq_ * D * x_it        # output blocks
        scratch = 2 * bt_ * tq_ * 128 * 4 + bt_ * tq_ * D * 4   # m, l, acc
        if keys_on_lanes:
            live = (4 * bt_ * tq_ * tk_ * 4                       # s/p/temps
                    + bt_ * (tq_ + tk_) * D * c_it)               # casts
        else:
            # ~3 live copies of the 4-D tanh tile coexist + s/p.
            live = 3 * bt_ * tq_ * tk_ * D * c_it + 2 * bt_ * tq_ * tk_ * 4
        return blocks + scratch + live

    fit = int(0.80 * vmem_cap)
    for _ in range(16):
        if _vmem_estimate(bt, tq, tk) <= fit:
            break
        if tk_auto:
            new_tk = _largest_divisor(T, max(min(T, 8), tk // 2))
            if new_tk < tk:
                tk = new_tk
                continue
        if tq_auto:
            new_tq = _largest_divisor(T, max(min(T, 8), tq // 2))
            if new_tq < tq:
                tq = new_tq
                continue
        if bt_auto and bt > 1:
            bt = _largest_divisor(B, max(1, bt // 2))
            continue
        break

    nb, nq, nk = B // bt, T // tq, T // tk

    est_bytes = _vmem_estimate(bt, tq, tk)
    vmem_limit = None
    if est_bytes > (24 << 20):     # past the typical scoped default
        vmem_limit = int(min(max(est_bytes * 1.3, 32 << 20),
                             int(0.9 * vmem_cap)))

    # ---- specs ----------------------------------------------------------------
    if per_batch_bias:
        bias_spec = pl.BlockSpec((bt, tq, tk), lambda b, q, k: (b, q, k))
    else:
        bias_spec = pl.BlockSpec((1, tq, tk), lambda b, q, k: (0, q, k))
    if keys_on_lanes:
        kp_spec = pl.BlockSpec((bt, D, tk), lambda b, q, k: (b, 0, k))
    else:
        kp_spec = pl.BlockSpec((bt, tk, D), lambda b, q, k: (b, k, 0))

    kernel = functools.partial(_fusion_attn_kernel,
                               compute_dtype=compute_dtype,
                               keys_on_lanes=keys_on_lanes)

    return pl.pallas_call(
        kernel,
        out_shape=jax.ShapeDtypeStruct((B, T, D), x.dtype),
        grid_spec=pltpu.PrefetchScalarGridSpec(
            num_scalar_prefetch=0,
            grid=(nb, nq, nk),
            in_specs=[
                pl.BlockSpec((bt, tq, D), lambda b, q, k: (b, q, 0)),  # qp
                kp_spec,                                               # kp / kpT
                pl.BlockSpec((bt, tk, D), lambda b, q, k: (b, k, 0)),  # values
                bias_spec,                                             # mask bias
                pl.BlockSpec((1, D), lambda b, q, k: (0, 0)),          # Va
            ],
            out_specs=pl.BlockSpec((bt, tq, D), lambda b, q, k: (b, q, 0)),
            scratch_shapes=[
                pltpu.VMEM((bt, tq, 1), jnp.float32),   # running max m
                pltpu.VMEM((bt, tq, 1), jnp.float32),   # running sum l
                pltpu.VMEM((bt, tq, D), jnp.float32),   # output accumulator
            ]),
        compiler_params=pltpu.CompilerParams(
            dimension_semantics=("parallel", "parallel", "arbitrary"),
            vmem_limit_bytes=vmem_limit),
    )(qp, kp_in, x, bias, va2)


def reference(x, mask, wa, ba, ua, bu, va, bva):
    """Pure-JAX reference mirroring the PyTorch forward (eval mode)."""
    qp = x @ wa.T + ba                                            # (B, T, D)
    kp = x @ ua.T + bu                                            # (B, T, D)
    a = jnp.tanh(qp[:, :, None, :] + kp[:, None, :, :])           # (B, T, T, D)
    wei = jnp.einsum('bqkd,d->bqk', a, va[0]) + bva[0]            # (B, T, T)
    m = mask if mask.ndim == 3 else mask[None]
    wei = jnp.where(m == 0, -jnp.inf, wei)
    wei = jax.nn.softmax(wei, axis=-1)
    return jnp.einsum('bqk,bkd->bqd', wei, x)


if __name__ == "__main__":
    B, T, D = 2, 8, 32
    key = jax.random.PRNGKey(0)
    kx, kwa, kba, kua, kbu, kva, kbva = jax.random.split(key, 7)

    x = jax.random.normal(kx, (B, T, D), dtype=jnp.float32)

    # Parameters follow nn.Linear(d_model, d_model) / nn.Linear(d_model, 1),
    # PyTorch weight layout (out_features, in_features).
    wa = 0.1 * jax.random.normal(kwa, (D, D), dtype=jnp.float32)
    ba = 0.1 * jax.random.normal(kba, (D,), dtype=jnp.float32)
    ua = 0.1 * jax.random.normal(kua, (D, D), dtype=jnp.float32)
    bu = 0.1 * jax.random.normal(kbu, (D,), dtype=jnp.float32)
    va = 0.1 * jax.random.normal(kva, (1, D), dtype=jnp.float32)
    bva = 0.1 * jax.random.normal(kbva, (1,), dtype=jnp.float32)

    # Shared causal mask (0 => masked) streamed once, not replicated per batch.
    mask_shared = jnp.tril(jnp.ones((T, T), dtype=jnp.int32))
    ref = reference(x, mask_shared, wa, ba, ua, bu, va, bva)

    # 1) small-D lane-dense-key path, f32 energies: tight parity with f32 ref.
    out = jax.block_until_ready(
        fusion_self_attention(x, mask_shared, wa, ba, ua, bu, va, bva,
                              compute_dtype=jnp.float32))
    assert out.shape == (B, T, D)
    assert jnp.allclose(out, ref, atol=5e-4, rtol=5e-4), "small-D f32 mismatch"

    # 2) per-batch mask path (same kernel; per-batch additive-bias BlockSpec).
    mask_batched = jnp.broadcast_to(mask_shared, (B, T, T))
    out_b = jax.block_until_ready(
        fusion_self_attention(x, mask_batched, wa, ba, ua, bu, va, bva,
                              compute_dtype=jnp.float32))
    assert jnp.allclose(out_b, ref, atol=5e-4, rtol=5e-4), "per-batch mask mismatch"

    # 3) general (D-on-lanes) path, f32 — exercises the 4-D tanh-tile code path.
    out_g = jax.block_until_ready(
        fusion_self_attention(x, mask_shared, wa, ba, ua, bu, va, bva,
                              compute_dtype=jnp.float32, keys_on_lanes=False))
    assert jnp.allclose(out_g, ref, atol=5e-4, rtol=5e-4), "general-path mismatch"

    # 4) auto compute dtype (bf16 energies on v6e/v7x) — looser parity vs f32 ref.
    out_a = jax.block_until_ready(
        fusion_self_attention(x, mask_shared, wa, ba, ua, bu, va, bva))
    assert jnp.allclose(out_a, ref, atol=3e-2, rtol=3e-2), "auto-dtype mismatch"

    print("KERNEL_OK")
</pallas_src>

<mosaic_0001>
module attributes {stable_mosaic.version = 11 : i64} {
  func.func @_fusion_attn_kernel(%arg0: i32, %arg1: i32, %arg2: i32, %arg3: memref<2x8x32xf32, #tpu.memory_space<vmem>>, %arg4: memref<2x32x8xf32, #tpu.memory_space<vmem>>, %arg5: memref<2x8x32xf32, #tpu.memory_space<vmem>>, %arg6: memref<1x8x8xbf16, #tpu.memory_space<vmem>>, %arg7: memref<1x32xf32, #tpu.memory_space<vmem>>, %arg8: memref<2x8x32xf32, #tpu.memory_space<vmem>>, %arg9: memref<2x8x1xf32, #tpu.memory_space<vmem>>, %arg10: memref<2x8x1xf32, #tpu.memory_space<vmem>>, %arg11: memref<2x8x32xf32, #tpu.memory_space<vmem>>) attributes {dimension_semantics = [#tpu.dimension_semantics<parallel>, #tpu.dimension_semantics<parallel>, #tpu.dimension_semantics<arbitrary>], iteration_bounds = array<i64: 1, 1, 1>, scalar_prefetch = 0 : i64, scratch_operands = 3 : i64, tpu.core_type = #tpu.core_type<tc>, window_params = [{transform_indices = @transform_0, window_bounds = array<i64: 2, 8, 32>}, {transform_indices = @transform_1, window_bounds = array<i64: 2, 32, 8>}, {transform_indices = @transform_2, window_bounds = array<i64: 2, 8, 32>}, {transform_indices = @transform_3, window_bounds = array<i64: 1, 8, 8>}, {pipeline_mode = #tpu.pipeline_mode<synchronous>, transform_indices = @transform_4, window_bounds = array<i64: 1, 32>}, {transform_indices = @transform_5, window_bounds = array<i64: 2, 8, 32>}]} {
    %c0_i32 = arith.constant 0 : i32
    %0 = arith.cmpi eq, %arg2, %c0_i32 : i32
    %1 = arith.extui %0 : i1 to i32
    %c0_i32_0 = arith.constant 0 : i32
    %2 = arith.cmpi ne, %1, %c0_i32_0 : i32
    scf.if %2 {
      %cst_37 = arith.constant 0xFF800000 : f32
      %389 = vector.broadcast %cst_37 : f32 to vector<2x8x1xf32>
      %c0_38 = arith.constant 0 : index
      %c0_39 = arith.constant 0 : index
      %c0_40 = arith.constant 0 : index
      %390 = vector.load %arg9[%c0_38, %c0_39, %c0_40] : memref<2x8x1xf32, #tpu.memory_space<vmem>>, vector<2x8x1xf32>
      tpu.vector_store %arg9[%c0_38, %c0_39, %c0_40], %389 {strides = array<i32>} : memref<2x8x1xf32, #tpu.memory_space<vmem>>, vector<2x8x1xf32>,
      %cst_41 = arith.constant 0.000000e+00 : f32
      %391 = vector.broadcast %cst_41 : f32 to vector<2x8x1xf32>
      %c0_42 = arith.constant 0 : index
      %c0_43 = arith.constant 0 : index
      %c0_44 = arith.constant 0 : index
      %392 = vector.load %arg10[%c0_42, %c0_43, %c0_44] : memref<2x8x1xf32, #tpu.memory_space<vmem>>, vector<2x8x1xf32>
      tpu.vector_store %arg10[%c0_42, %c0_43, %c0_44], %391 {strides = array<i32>} : memref<2x8x1xf32, #tpu.memory_space<vmem>>, vector<2x8x1xf32>,
      %cst_45 = arith.constant 0.000000e+00 : f32
      %393 = vector.broadcast %cst_45 : f32 to vector<2x8x32xf32>
      %c0_46 = arith.constant 0 : index
      %c0_47 = arith.constant 0 : index
      %c0_48 = arith.constant 0 : index
      %394 = vector.load %arg11[%c0_46, %c0_47, %c0_48] : memref<2x8x32xf32, #tpu.memory_space<vmem>>, vector<2x8x32xf32>
      tpu.vector_store %arg11[%c0_46, %c0_47, %c0_48], %393 {strides = array<i32>} : memref<2x8x32xf32, #tpu.memory_space<vmem>>, vector<2x8x32xf32>,
    } else {
    }
    %c0 = arith.constant 0 : index
    %c0_1 = arith.constant 0 : index
    %c0_2 = arith.constant 0 : index
    %3 = vector.load %arg5[%c0, %c0_1, %c0_2] : memref<2x8x32xf32, #tpu.memory_space<vmem>>, vector<2x8x32xf32>
    %c0_3 = arith.constant 0 : index
    %c0_4 = arith.constant 0 : index
    %c0_5 = arith.constant 0 : index
    %4 = vector.load %arg6[%c0_3, %c0_4, %c0_5] : memref<1x8x8xbf16, #tpu.memory_space<vmem>>, vector<1x8x8xbf16>
    %5 = arith.extf %4 : vector<1x8x8xbf16> to vector<1x8x8xf32>
    %c0_6 = arith.constant 0 : index
    %c0_7 = arith.constant 0 : index
    %c0_8 = arith.constant 0 : index
    %6 = vector.load %arg3[%c0_6, %c0_7, %c0_8] : memref<2x8x32xf32, #tpu.memory_space<vmem>>, vector<2x8x32xf32>
    %c0_9 = arith.constant 0 : index
    %c0_10 = arith.constant 0 : index
    %c0_11 = arith.constant 0 : index
    %7 = vector.load %arg4[%c0_9, %c0_10, %c0_11] : memref<2x32x8xf32, #tpu.memory_space<vmem>>, vector<2x32x8xf32>
    %c0_12 = arith.constant 0 : index
    %c0_13 = arith.constant 0 : index
    %8 = vector.load %arg7[%c0_12, %c0_13] : memref<1x32xf32, #tpu.memory_space<vmem>>, vector<1x32xf32>
    %cst = arith.constant 0.000000e+00 : f32
    %9 = vector.broadcast %cst : f32 to vector<2x8x8xf32>
    %10 = vector.extract_strided_slice %6 {offsets = [0, 0, 0], sizes = [2, 8, 1], strides = [1, 1, 1]} : vector<2x8x32xf32> to vector<2x8x1xf32>
    %11 = vector.extract_strided_slice %7 {offsets = [0, 0, 0], sizes = [2, 1, 8], strides = [1, 1, 1]} : vector<2x32x8xf32> to vector<2x1x8xf32>
    %12 = vector.broadcast %10 : vector<2x8x1xf32> to vector<2x8x8xf32>
    %13 = vector.broadcast %11 : vector<2x1x8xf32> to vector<2x8x8xf32>
    %14 = arith.addf %12, %13 : vector<2x8x8xf32>
    %15 = math.tanh %14 : vector<2x8x8xf32>
    %16 = vector.extract_strided_slice %8 {offsets = [0, 0], sizes = [1, 1], strides = [1, 1]} : vector<1x32xf32> to vector<1x1xf32>
    %17 = vector.shape_cast %16 : vector<1x1xf32> to vector<1x1x1xf32>
    %18 = vector.broadcast %17 : vector<1x1x1xf32> to vector<2x8x8xf32>
    %19 = arith.mulf %15, %18 : vector<2x8x8xf32>
    %20 = arith.addf %9, %19 : vector<2x8x8xf32>
    %21 = vector.extract_strided_slice %6 {offsets = [0, 0, 1], sizes = [2, 8, 1], strides = [1, 1, 1]} : vector<2x8x32xf32> to vector<2x8x1xf32>
    %22 = vector.extract_strided_slice %7 {offsets = [0, 1, 0], sizes = [2, 1, 8], strides = [1, 1, 1]} : vector<2x32x8xf32> to vector<2x1x8xf32>
    %23 = vector.broadcast %21 : vector<2x8x1xf32> to vector<2x8x8xf32>
    %24 = vector.broadcast %22 : vector<2x1x8xf32> to vector<2x8x8xf32>
    %25 = arith.addf %23, %24 : vector<2x8x8xf32>
    %26 = math.tanh %25 : vector<2x8x8xf32>
    %27 = vector.extract_strided_slice %8 {offsets = [0, 1], sizes = [1, 1], strides = [1, 1]} : vector<1x32xf32> to vector<1x1xf32>
    %28 = vector.shape_cast %27 : vector<1x1xf32> to vector<1x1x1xf32>
    %29 = vector.broadcast %28 : vector<1x1x1xf32> to vector<2x8x8xf32>
    %30 = arith.mulf %26, %29 : vector<2x8x8xf32>
    %31 = arith.addf %20, %30 : vector<2x8x8xf32>
    %32 = vector.extract_strided_slice %6 {offsets = [0, 0, 2], sizes = [2, 8, 1], strides = [1, 1, 1]} : vector<2x8x32xf32> to vector<2x8x1xf32>
    %33 = vector.extract_strided_slice %7 {offsets = [0, 2, 0], sizes = [2, 1, 8], strides = [1, 1, 1]} : vector<2x32x8xf32> to vector<2x1x8xf32>
    %34 = vector.broadcast %32 : vector<2x8x1xf32> to vector<2x8x8xf32>
    %35 = vector.broadcast %33 : vector<2x1x8xf32> to vector<2x8x8xf32>
    %36 = arith.addf %34, %35 : vector<2x8x8xf32>
    %37 = math.tanh %36 : vector<2x8x8xf32>
    %38 = vector.extract_strided_slice %8 {offsets = [0, 2], sizes = [1, 1], strides = [1, 1]} : vector<1x32xf32> to vector<1x1xf32>
    %39 = vector.shape_cast %38 : vector<1x1xf32> to vector<1x1x1xf32>
    %40 = vector.broadcast %39 : vector<1x1x1xf32> to vector<2x8x8xf32>
    %41 = arith.mulf %37, %40 : vector<2x8x8xf32>
    %42 = arith.addf %31, %41 : vector<2x8x8xf32>
    %43 = vector.extract_strided_slice %6 {offsets = [0, 0, 3], sizes = [2, 8, 1], strides = [1, 1, 1]} : vector<2x8x32xf32> to vector<2x8x1xf32>
    %44 = vector.extract_strided_slice %7 {offsets = [0, 3, 0], sizes = [2, 1, 8], strides = [1, 1, 1]} : vector<2x32x8xf32> to vector<2x1x8xf32>
    %45 = vector.broadcast %43 : vector<2x8x1xf32> to vector<2x8x8xf32>
    %46 = vector.broadcast %44 : vector<2x1x8xf32> to vector<2x8x8xf32>
    %47 = arith.addf %45, %46 : vector<2x8x8xf32>
    %48 = math.tanh %47 : vector<2x8x8xf32>
    %49 = vector.extract_strided_slice %8 {offsets = [0, 3], sizes = [1, 1], strides = [1, 1]} : vector<1x32xf32> to vector<1x1xf32>
    %50 = vector.shape_cast %49 : vector<1x1xf32> to vector<1x1x1xf32>
    %51 = vector.broadcast %50 : vector<1x1x1xf32> to vector<2x8x8xf32>
    %52 = arith.mulf %48, %51 : vector<2x8x8xf32>
    %53 = arith.addf %42, %52 : vector<2x8x8xf32>
    %54 = vector.extract_strided_slice %6 {offsets = [0, 0, 4], sizes = [2, 8, 1], strides = [1, 1, 1]} : vector<2x8x32xf32> to vector<2x8x1xf32>
    %55 = vector.extract_strided_slice %7 {offsets = [0, 4, 0], sizes = [2, 1, 8], strides = [1, 1, 1]} : vector<2x32x8xf32> to vector<2x1x8xf32>
    %56 = vector.broadcast %54 : vector<2x8x1xf32> to vector<2x8x8xf32>
    %57 = vector.broadcast %55 : vector<2x1x8xf32> to vector<2x8x8xf32>
    %58 = arith.addf %56, %57 : vector<2x8x8xf32>
    %59 = math.tanh %58 : vector<2x8x8xf32>
    %60 = vector.extract_strided_slice %8 {offsets = [0, 4], sizes = [1, 1], strides = [1, 1]} : vector<1x32xf32> to vector<1x1xf32>
    %61 = vector.shape_cast %60 : vector<1x1xf32> to vector<1x1x1xf32>
    %62 = vector.broadcast %61 : vector<1x1x1xf32> to vector<2x8x8xf32>
    %63 = arith.mulf %59, %62 : vector<2x8x8xf32>
    %64 = arith.addf %53, %63 : vector<2x8x8xf32>
    %65 = vector.extract_strided_slice %6 {offsets = [0, 0, 5], sizes = [2, 8, 1], strides = [1, 1, 1]} : vector<2x8x32xf32> to vector<2x8x1xf32>
    %66 = vector.extract_strided_slice %7 {offsets = [0, 5, 0], sizes = [2, 1, 8], strides = [1, 1, 1]} : vector<2x32x8xf32> to vector<2x1x8xf32>
    %67 = vector.broadcast %65 : vector<2x8x1xf32> to vector<2x8x8xf32>
    %68 = vector.broadcast %66 : vector<2x1x8xf32> to vector<2x8x8xf32>
    %69 = arith.addf %67, %68 : vector<2x8x8xf32>
    %70 = math.tanh %69 : vector<2x8x8xf32>
    %71 = vector.extract_strided_slice %8 {offsets = [0, 5], sizes = [1, 1], strides = [1, 1]} : vector<1x32xf32> to vector<1x1xf32>
    %72 = vector.shape_cast %71 : vector<1x1xf32> to vector<1x1x1xf32>
    %73 = vector.broadcast %72 : vector<1x1x1xf32> to vector<2x8x8xf32>
    %74 = arith.mulf %70, %73 : vector<2x8x8xf32>
    %75 = arith.addf %64, %74 : vector<2x8x8xf32>
    %76 = vector.extract_strided_slice %6 {offsets = [0, 0, 6], sizes = [2, 8, 1], strides = [1, 1, 1]} : vector<2x8x32xf32> to vector<2x8x1xf32>
    %77 = vector.extract_strided_slice %7 {offsets = [0, 6, 0], sizes = [2, 1, 8], strides = [1, 1, 1]} : vector<2x32x8xf32> to vector<2x1x8xf32>
    %78 = vector.broadcast %76 : vector<2x8x1xf32> to vector<2x8x8xf32>
    %79 = vector.broadcast %77 : vector<2x1x8xf32> to vector<2x8x8xf32>
    %80 = arith.addf %78, %79 : vector<2x8x8xf32>
    %81 = math.tanh %80 : vector<2x8x8xf32>
    %82 = vector.extract_strided_slice %8 {offsets = [0, 6], sizes = [1, 1], strides = [1, 1]} : vector<1x32xf32> to vector<1x1xf32>
    %83 = vector.shape_cast %82 : vector<1x1xf32> to vector<1x1x1xf32>
    %84 = vector.broadcast %83 : vector<1x1x1xf32> to vector<2x8x8xf32>
    %85 = arith.mulf %81, %84 : vector<2x8x8xf32>
    %86 = arith.addf %75, %85 : vector<2x8x8xf32>
    %87 = vector.extract_strided_slice %6 {offsets = [0, 0, 7], sizes = [2, 8, 1], strides = [1, 1, 1]} : vector<2x8x32xf32> to vector<2x8x1xf32>
    %88 = vector.extract_strided_slice %7 {offsets = [0, 7, 0], sizes = [2, 1, 8], strides = [1, 1, 1]} : vector<2x32x8xf32> to vector<2x1x8xf32>
    %89 = vector.broadcast %87 : vector<2x8x1xf32> to vector<2x8x8xf32>
    %90 = vector.broadcast %88 : vector<2x1x8xf32> to vector<2x8x8xf32>
    %91 = arith.addf %89, %90 : vector<2x8x8xf32>
    %92 = math.tanh %91 : vector<2x8x8xf32>
    %93 = vector.extract_strided_slice %8 {offsets = [0, 7], sizes = [1, 1], strides = [1, 1]} : vector<1x32xf32> to vector<1x1xf32>
    %94 = vector.shape_cast %93 : vector<1x1xf32> to vector<1x1x1xf32>
    %95 = vector.broadcast %94 : vector<1x1x1xf32> to vector<2x8x8xf32>
    %96 = arith.mulf %92, %95 : vector<2x8x8xf32>
    %97 = arith.addf %86, %96 : vector<2x8x8xf32>
    %98 = vector.extract_strided_slice %6 {offsets = [0, 0, 8], sizes = [2, 8, 1], strides = [1, 1, 1]} : vector<2x8x32xf32> to vector<2x8x1xf32>
    %99 = vector.extract_strided_slice %7 {offsets = [0, 8, 0], sizes = [2, 1, 8], strides = [1, 1, 1]} : vector<2x32x8xf32> to vector<2x1x8xf32>
    %100 = vector.broadcast %98 : vector<2x8x1xf32> to vector<2x8x8xf32>
    %101 = vector.broadcast %99 : vector<2x1x8xf32> to vector<2x8x8xf32>
    %102 = arith.addf %100, %101 : vector<2x8x8xf32>
    %103 = math.tanh %102 : vector<2x8x8xf32>
    %104 = vector.extract_strided_slice %8 {offsets = [0, 8], sizes = [1, 1], strides = [1, 1]} : vector<1x32xf32> to vector<1x1xf32>
    %105 = vector.shape_cast %104 : vector<1x1xf32> to vector<1x1x1xf32>
    %106 = vector.broadcast %105 : vector<1x1x1xf32> to vector<2x8x8xf32>
    %107 = arith.mulf %103, %106 : vector<2x8x8xf32>
    %108 = arith.addf %97, %107 : vector<2x8x8xf32>
    %109 = vector.extract_strided_slice %6 {offsets = [0, 0, 9], sizes = [2, 8, 1], strides = [1, 1, 1]} : vector<2x8x32xf32> to vector<2x8x1xf32>
    %110 = vector.extract_strided_slice %7 {offsets = [0, 9, 0], sizes = [2, 1, 8], strides = [1, 1, 1]} : vector<2x32x8xf32> to vector<2x1x8xf32>
    %111 = vector.broadcast %109 : vector<2x8x1xf32> to vector<2x8x8xf32>
    %112 = vector.broadcast %110 : vector<2x1x8xf32> to vector<2x8x8xf32>
    %113 = arith.addf %111, %112 : vector<2x8x8xf32>
    %114 = math.tanh %113 : vector<2x8x8xf32>
    %115 = vector.extract_strided_slice %8 {offsets = [0, 9], sizes = [1, 1], strides = [1, 1]} : vector<1x32xf32> to vector<1x1xf32>
    %116 = vector.shape_cast %115 : vector<1x1xf32> to vector<1x1x1xf32>
    %117 = vector.broadcast %116 : vector<1x1x1xf32> to vector<2x8x8xf32>
    %118 = arith.mulf %114, %117 : vector<2x8x8xf32>
    %119 = arith.addf %108, %118 : vector<2x8x8xf32>
    %120 = vector.extract_strided_slice %6 {offsets = [0, 0, 10], sizes = [2, 8, 1], strides = [1, 1, 1]} : vector<2x8x32xf32> to vector<2x8x1xf32>
    %121 = vector.extract_strided_slice %7 {offsets = [0, 10, 0], sizes = [2, 1, 8], strides = [1, 1, 1]} : vector<2x32x8xf32> to vector<2x1x8xf32>
    %122 = vector.broadcast %120 : vector<2x8x1xf32> to vector<2x8x8xf32>
    %123 = vector.broadcast %121 : vector<2x1x8xf32> to vector<2x8x8xf32>
    %124 = arith.addf %122, %123 : vector<2x8x8xf32>
    %125 = math.tanh %124 : vector<2x8x8xf32>
    %126 = vector.extract_strided_slice %8 {offsets = [0, 10], sizes = [1, 1], strides = [1, 1]} : vector<1x32xf32> to vector<1x1xf32>
    %127 = vector.shape_cast %126 : vector<1x1xf32> to vector<1x1x1xf32>
    %128 = vector.broadcast %127 : vector<1x1x1xf32> to vector<2x8x8xf32>
    %129 = arith.mulf %125, %128 : vector<2x8x8xf32>
    %130 = arith.addf %119, %129 : vector<2x8x8xf32>
    %131 = vector.extract_strided_slice %6 {offsets = [0, 0, 11], sizes = [2, 8, 1], strides = [1, 1, 1]} : vector<2x8x32xf32> to vector<2x8x1xf32>
    %132 = vector.extract_strided_slice %7 {offsets = [0, 11, 0], sizes = [2, 1, 8], strides = [1, 1, 1]} : vector<2x32x8xf32> to vector<2x1x8xf32>
    %133 = vector.broadcast %131 : vector<2x8x1xf32> to vector<2x8x8xf32>
    %134 = vector.broadcast %132 : vector<2x1x8xf32> to vector<2x8x8xf32>
    %135 = arith.addf %133, %134 : vector<2x8x8xf32>
    %136 = math.tanh %135 : vector<2x8x8xf32>
    %137 = vector.extract_strided_slice %8 {offsets = [0, 11], sizes = [1, 1], strides = [1, 1]} : vector<1x32xf32> to vector<1x1xf32>
    %138 = vector.shape_cast %137 : vector<1x1xf32> to vector<1x1x1xf32>
    %139 = vector.broadcast %138 : vector<1x1x1xf32> to vector<2x8x8xf32>
    %140 = arith.mulf %136, %139 : vector<2x8x8xf32>
    %141 = arith.addf %130, %140 : vector<2x8x8xf32>
    %142 = vector.extract_strided_slice %6 {offsets = [0, 0, 12], sizes = [2, 8, 1], strides = [1, 1, 1]} : vector<2x8x32xf32> to vector<2x8x1xf32>
    %143 = vector.extract_strided_slice %7 {offsets = [0, 12, 0], sizes = [2, 1, 8], strides = [1, 1, 1]} : vector<2x32x8xf32> to vector<2x1x8xf32>
    %144 = vector.broadcast %142 : vector<2x8x1xf32> to vector<2x8x8xf32>
    %145 = vector.broadcast %143 : vector<2x1x8xf32> to vector<2x8x8xf32>
    %146 = arith.addf %144, %145 : vector<2x8x8xf32>
    %147 = math.tanh %146 : vector<2x8x8xf32>
    %148 = vector.extract_strided_slice %8 {offsets = [0, 12], sizes = [1, 1], strides = [1, 1]} : vector<1x32xf32> to vector<1x1xf32>
    %149 = vector.shape_cast %148 : vector<1x1xf32> to vector<1x1x1xf32>
    %150 = vector.broadcast %149 : vector<1x1x1xf32> to vector<2x8x8xf32>
    %151 = arith.mulf %147, %150 : vector<2x8x8xf32>
    %152 = arith.addf %141, %151 : vector<2x8x8xf32>
    %153 = vector.extract_strided_slice %6 {offsets = [0, 0, 13], sizes = [2, 8, 1], strides = [1, 1, 1]} : vector<2x8x32xf32> to vector<2x8x1xf32>
    %154 = vector.extract_strided_slice %7 {offsets = [0, 13, 0], sizes = [2, 1, 8], strides = [1, 1, 1]} : vector<2x32x8xf32> to vector<2x1x8xf32>
    %155 = vector.broadcast %153 : vector<2x8x1xf32> to vector<2x8x8xf32>
    %156 = vector.broadcast %154 : vector<2x1x8xf32> to vector<2x8x8xf32>
    %157 = arith.addf %155, %156 : vector<2x8x8xf32>
    %158 = math.tanh %157 : vector<2x8x8xf32>
    %159 = vector.extract_strided_slice %8 {offsets = [0, 13], sizes = [1, 1], strides = [1, 1]} : vector<1x32xf32> to vector<1x1xf32>
    %160 = vector.shape_cast %159 : vector<1x1xf32> to vector<1x1x1xf32>
    %161 = vector.broadcast %160 : vector<1x1x1xf32> to vector<2x8x8xf32>
    %162 = arith.mulf %158, %161 : vector<2x8x8xf32>
    %163 = arith.addf %152, %162 : vector<2x8x8xf32>
    %164 = vector.extract_strided_slice %6 {offsets = [0, 0, 14], sizes = [2, 8, 1], strides = [1, 1, 1]} : vector<2x8x32xf32> to vector<2x8x1xf32>
    %165 = vector.extract_strided_slice %7 {offsets = [0, 14, 0], sizes = [2, 1, 8], strides = [1, 1, 1]} : vector<2x32x8xf32> to vector<2x1x8xf32>
    %166 = vector.broadcast %164 : vector<2x8x1xf32> to vector<2x8x8xf32>
    %167 = vector.broadcast %165 : vector<2x1x8xf32> to vector<2x8x8xf32>
    %168 = arith.addf %166, %167 : vector<2x8x8xf32>
    %169 = math.tanh %168 : vector<2x8x8xf32>
    %170 = vector.extract_strided_slice %8 {offsets = [0, 14], sizes = [1, 1], strides = [1, 1]} : vector<1x32xf32> to vector<1x1xf32>
    %171 = vector.shape_cast %170 : vector<1x1xf32> to vector<1x1x1xf32>
    %172 = vector.broadcast %171 : vector<1x1x1xf32> to vector<2x8x8xf32>
    %173 = arith.mulf %169, %172 : vector<2x8x8xf32>
    %174 = arith.addf %163, %173 : vector<2x8x8xf32>
    %175 = vector.extract_strided_slice %6 {offsets = [0, 0, 15], sizes = [2, 8, 1], strides = [1, 1, 1]} : vector<2x8x32xf32> to vector<2x8x1xf32>
    %176 = vector.extract_strided_slice %7 {offsets = [0, 15, 0], sizes = [2, 1, 8], strides = [1, 1, 1]} : vector<2x32x8xf32> to vector<2x1x8xf32>
    %177 = vector.broadcast %175 : vector<2x8x1xf32> to vector<2x8x8xf32>
    %178 = vector.broadcast %176 : vector<2x1x8xf32> to vector<2x8x8xf32>
    %179 = arith.addf %177, %178 : vector<2x8x8xf32>
    %180 = math.tanh %179 : vector<2x8x8xf32>
    %181 = vector.extract_strided_slice %8 {offsets = [0, 15], sizes = [1, 1], strides = [1, 1]} : vector<1x32xf32> to vector<1x1xf32>
    %182 = vector.shape_cast %181 : vector<1x1xf32> to vector<1x1x1xf32>
    %183 = vector.broadcast %182 : vector<1x1x1xf32> to vector<2x8x8xf32>
    %184 = arith.mulf %180, %183 : vector<2x8x8xf32>
    %185 = arith.addf %174, %184 : vector<2x8x8xf32>
    %186 = vector.extract_strided_slice %6 {offsets = [0, 0, 16], sizes = [2, 8, 1], strides = [1, 1, 1]} : vector<2x8x32xf32> to vector<2x8x1xf32>
    %187 = vector.extract_strided_slice %7 {offsets = [0, 16, 0], sizes = [2, 1, 8], strides = [1, 1, 1]} : vector<2x32x8xf32> to vector<2x1x8xf32>
    %188 = vector.broadcast %186 : vector<2x8x1xf32> to vector<2x8x8xf32>
    %189 = vector.broadcast %187 : vector<2x1x8xf32> to vector<2x8x8xf32>
    %190 = arith.addf %188, %189 : vector<2x8x8xf32>
    %191 = math.tanh %190 : vector<2x8x8xf32>
    %192 = vector.extract_strided_slice %8 {offsets = [0, 16], sizes = [1, 1], strides = [1, 1]} : vector<1x32xf32> to vector<1x1xf32>
    %193 = vector.shape_cast %192 : vector<1x1xf32> to vector<1x1x1xf32>
    %194 = vector.broadcast %193 : vector<1x1x1xf32> to vector<2x8x8xf32>
    %195 = arith.mulf %191, %194 : vector<2x8x8xf32>
    %196 = arith.addf %185, %195 : vector<2x8x8xf32>
    %197 = vector.extract_strided_slice %6 {offsets = [0, 0, 17], sizes = [2, 8, 1], strides = [1, 1, 1]} : vector<2x8x32xf32> to vector<2x8x1xf32>
    %198 = vector.extract_strided_slice %7 {offsets = [0, 17, 0], sizes = [2, 1, 8], strides = [1, 1, 1]} : vector<2x32x8xf32> to vector<2x1x8xf32>
    %199 = vector.broadcast %197 : vector<2x8x1xf32> to vector<2x8x8xf32>
    %200 = vector.broadcast %198 : vector<2x1x8xf32> to vector<2x8x8xf32>
    %201 = arith.addf %199, %200 : vector<2x8x8xf32>
    %202 = math.tanh %201 : vector<2x8x8xf32>
    %203 = vector.extract_strided_slice %8 {offsets = [0, 17], sizes = [1, 1], strides = [1, 1]} : vector<1x32xf32> to vector<1x1xf32>
    %204 = vector.shape_cast %203 : vector<1x1xf32> to vector<1x1x1xf32>
    %205 = vector.broadcast %204 : vector<1x1x1xf32> to vector<2x8x8xf32>
    %206 = arith.mulf %202, %205 : vector<2x8x8xf32>
    %207 = arith.addf %196, %206 : vector<2x8x8xf32>
    %208 = vector.extract_strided_slice %6 {offsets = [0, 0, 18], sizes = [2, 8, 1], strides = [1, 1, 1]} : vector<2x8x32xf32> to vector<2x8x1xf32>
    %209 = vector.extract_strided_slice %7 {offsets = [0, 18, 0], sizes = [2, 1, 8], strides = [1, 1, 1]} : vector<2x32x8xf32> to vector<2x1x8xf32>
    %210 = vector.broadcast %208 : vector<2x8x1xf32> to vector<2x8x8xf32>
    %211 = vector.broadcast %209 : vector<2x1x8xf32> to vector<2x8x8xf32>
    %212 = arith.addf %210, %211 : vector<2x8x8xf32>
    %213 = math.tanh %212 : vector<2x8x8xf32>
    %214 = vector.extract_strided_slice %8 {offsets = [0, 18], sizes = [1, 1], strides = [1, 1]} : vector<1x32xf32> to vector<1x1xf32>
    %215 = vector.shape_cast %214 : vector<1x1xf32> to vector<1x1x1xf32>
    %216 = vector.broadcast %215 : vector<1x1x1xf32> to vector<2x8x8xf32>
    %217 = arith.mulf %213, %216 : vector<2x8x8xf32>
    %218 = arith.addf %207, %217 : vector<2x8x8xf32>
    %219 = vector.extract_strided_slice %6 {offsets = [0, 0, 19], sizes = [2, 8, 1], strides = [1, 1, 1]} : vector<2x8x32xf32> to vector<2x8x1xf32>
    %220 = vector.extract_strided_slice %7 {offsets = [0, 19, 0], sizes = [2, 1, 8], strides = [1, 1, 1]} : vector<2x32x8xf32> to vector<2x1x8xf32>
    %221 = vector.broadcast %219 : vector<2x8x1xf32> to vector<2x8x8xf32>
    %222 = vector.broadcast %220 : vector<2x1x8xf32> to vector<2x8x8xf32>
    %223 = arith.addf %221, %222 : vector<2x8x8xf32>
    %224 = math.tanh %223 : vector<2x8x8xf32>
    %225 = vector.extract_strided_slice %8 {offsets = [0, 19], sizes = [1, 1], strides = [1, 1]} : vector<1x32xf32> to vector<1x1xf32>
    %226 = vector.shape_cast %225 : vector<1x1xf32> to vector<1x1x1xf32>
    %227 = vector.broadcast %226 : vector<1x1x1xf32> to vector<2x8x8xf32>
    %228 = arith.mulf %224, %227 : vector<2x8x8xf32>
    %229 = arith.addf %218, %228 : vector<2x8x8xf32>
    %230 = vector.extract_strided_slice %6 {offsets = [0, 0, 20], sizes = [2, 8, 1], strides = [1, 1, 1]} : vector<2x8x32xf32> to vector<2x8x1xf32>
    %231 = vector.extract_strided_slice %7 {offsets = [0, 20, 0], sizes = [2, 1, 8], strides = [1, 1, 1]} : vector<2x32x8xf32> to vector<2x1x8xf32>
    %232 = vector.broadcast %230 : vector<2x8x1xf32> to vector<2x8x8xf32>
    %233 = vector.broadcast %231 : vector<2x1x8xf32> to vector<2x8x8xf32>
    %234 = arith.addf %232, %233 : vector<2x8x8xf32>
    %235 = math.tanh %234 : vector<2x8x8xf32>
    %236 = vector.extract_strided_slice %8 {offsets = [0, 20], sizes = [1, 1], strides = [1, 1]} : vector<1x32xf32> to vector<1x1xf32>
    %237 = vector.shape_cast %236 : vector<1x1xf32> to vector<1x1x1xf32>
    %238 = vector.broadcast %237 : vector<1x1x1xf32> to vector<2x8x8xf32>
    %239 = arith.mulf %235, %238 : vector<2x8x8xf32>
    %240 = arith.addf %229, %239 : vector<2x8x8xf32>
    %241 = vector.extract_strided_slice %6 {offsets = [0, 0, 21], sizes = [2, 8, 1], strides = [1, 1, 1]} : vector<2x8x32xf32> to vector<2x8x1xf32>
    %242 = vector.extract_strided_slice %7 {offsets = [0, 21, 0], sizes = [2, 1, 8], strides = [1, 1, 1]} : vector<2x32x8xf32> to vector<2x1x8xf32>
    %243 = vector.broadcast %241 : vector<2x8x1xf32> to vector<2x8x8xf32>
    %244 = vector.broadcast %242 : vector<2x1x8xf32> to vector<2x8x8xf32>
    %245 = arith.addf %243, %244 : vector<2x8x8xf32>
    %246 = math.tanh %245 : vector<2x8x8xf32>
    %247 = vector.extract_strided_slice %8 {offsets = [0, 21], sizes = [1, 1], strides = [1, 1]} : vector<1x32xf32> to vector<1x1xf32>
    %248 = vector.shape_cast %247 : vector<1x1xf32> to vector<1x1x1xf32>
    %249 = vector.broadcast %248 : vector<1x1x1xf32> to vector<2x8x8xf32>
    %250 = arith.mulf %246, %249 : vector<2x8x8xf32>
    %251 = arith.addf %240, %250 : vector<2x8x8xf32>
    %252 = vector.extract_strided_slice %6 {offsets = [0, 0, 22], sizes = [2, 8, 1], strides = [1, 1, 1]} : vector<2x8x32xf32> to vector<2x8x1xf32>
    %253 = vector.extract_strided_slice %7 {offsets = [0, 22, 0], sizes = [2, 1, 8], strides = [1, 1, 1]} : vector<2x32x8xf32> to vector<2x1x8xf32>
    %254 = vector.broadcast %252 : vector<2x8x1xf32> to vector<2x8x8xf32>
    %255 = vector.broadcast %253 : vector<2x1x8xf32> to vector<2x8x8xf32>
    %256 = arith.addf %254, %255 : vector<2x8x8xf32>
    %257 = math.tanh %256 : vector<2x8x8xf32>
    %258 = vector.extract_strided_slice %8 {offsets = [0, 22], sizes = [1, 1], strides = [1, 1]} : vector<1x32xf32> to vector<1x1xf32>
    %259 = vector.shape_cast %258 : vector<1x1xf32> to vector<1x1x1xf32>
    %260 = vector.broadcast %259 : vector<1x1x1xf32> to vector<2x8x8xf32>
    %261 = arith.mulf %257, %260 : vector<2x8x8xf32>
    %262 = arith.addf %251, %261 : vector<2x8x8xf32>
    %263 = vector.extract_strided_slice %6 {offsets = [0, 0, 23], sizes = [2, 8, 1], strides = [1, 1, 1]} : vector<2x8x32xf32> to vector<2x8x1xf32>
    %264 = vector.extract_strided_slice %7 {offsets = [0, 23, 0], sizes = [2, 1, 8], strides = [1, 1, 1]} : vector<2x32x8xf32> to vector<2x1x8xf32>
    %265 = vector.broadcast %263 : vector<2x8x1xf32> to vector<2x8x8xf32>
    %266 = vector.broadcast %264 : vector<2x1x8xf32> to vector<2x8x8xf32>
    %267 = arith.addf %265, %266 : vector<2x8x8xf32>
    %268 = math.tanh %267 : vector<2x8x8xf32>
    %269 = vector.extract_strided_slice %8 {offsets = [0, 23], sizes = [1, 1], strides = [1, 1]} : vector<1x32xf32> to vector<1x1xf32>
    %270 = vector.shape_cast %269 : vector<1x1xf32> to vector<1x1x1xf32>
    %271 = vector.broadcast %270 : vector<1x1x1xf32> to vector<2x8x8xf32>
    %272 = arith.mulf %268, %271 : vector<2x8x8xf32>
    %273 = arith.addf %262, %272 : vector<2x8x8xf32>
    %274 = vector.extract_strided_slice %6 {offsets = [0, 0, 24], sizes = [2, 8, 1], strides = [1, 1, 1]} : vector<2x8x32xf32> to vector<2x8x1xf32>
    %275 = vector.extract_strided_slice %7 {offsets = [0, 24, 0], sizes = [2, 1, 8], strides = [1, 1, 1]} : vector<2x32x8xf32> to vector<2x1x8xf32>
    %276 = vector.broadcast %274 : vector<2x8x1xf32> to vector<2x8x8xf32>
    %277 = vector.broadcast %275 : vector<2x1x8xf32> to vector<2x8x8xf32>
    %278 = arith.addf %276, %277 : vector<2x8x8xf32>
    %279 = math.tanh %278 : vector<2x8x8xf32>
    %280 = vector.extract_strided_slice %8 {offsets = [0, 24], sizes = [1, 1], strides = [1, 1]} : vector<1x32xf32> to vector<1x1xf32>
    %281 = vector.shape_cast %280 : vector<1x1xf32> to vector<1x1x1xf32>
    %282 = vector.broadcast %281 : vector<1x1x1xf32> to vector<2x8x8xf32>
    %283 = arith.mulf %279, %282 : vector<2x8x8xf32>
    %284 = arith.addf %273, %283 : vector<2x8x8xf32>
    %285 = vector.extract_strided_slice %6 {offsets = [0, 0, 25], sizes = [2, 8, 1], strides = [1, 1, 1]} : vector<2x8x32xf32> to vector<2x8x1xf32>
    %286 = vector.extract_strided_slice %7 {offsets = [0, 25, 0], sizes = [2, 1, 8], strides = [1, 1, 1]} : vector<2x32x8xf32> to vector<2x1x8xf32>
    %287 = vector.broadcast %285 : vector<2x8x1xf32> to vector<2x8x8xf32>
    %288 = vector.broadcast %286 : vector<2x1x8xf32> to vector<2x8x8xf32>
    %289 = arith.addf %287, %288 : vector<2x8x8xf32>
    %290 = math.tanh %289 : vector<2x8x8xf32>
    %291 = vector.extract_strided_slice %8 {offsets = [0, 25], sizes = [1, 1], strides = [1, 1]} : vector<1x32xf32> to vector<1x1xf32>
    %292 = vector.shape_cast %291 : vector<1x1xf32> to vector<1x1x1xf32>
    %293 = vector.broadcast %292 : vector<1x1x1xf32> to vector<2x8x8xf32>
    %294 = arith.mulf %290, %293 : vector<2x8x8xf32>
    %295 = arith.addf %284, %294 : vector<2x8x8xf32>
    %296 = vector.extract_strided_slice %6 {offsets = [0, 0, 26], sizes = [2, 8, 1], strides = [1, 1, 1]} : vector<2x8x32xf32> to vector<2x8x1xf32>
    %297 = vector.extract_strided_slice %7 {offsets = [0, 26, 0], sizes = [2, 1, 8], strides = [1, 1, 1]} : vector<2x32x8xf32> to vector<2x1x8xf32>
    %298 = vector.broadcast %296 : vector<2x8x1xf32> to vector<2x8x8xf32>
    %299 = vector.broadcast %297 : vector<2x1x8xf32> to vector<2x8x8xf32>
    %300 = arith.addf %298, %299 : vector<2x8x8xf32>
    %301 = math.tanh %300 : vector<2x8x8xf32>
    %302 = vector.extract_strided_slice %8 {offsets = [0, 26], sizes = [1, 1], strides = [1, 1]} : vector<1x32xf32> to vector<1x1xf32>
    %303 = vector.shape_cast %302 : vector<1x1xf32> to vector<1x1x1xf32>
    %304 = vector.broadcast %303 : vector<1x1x1xf32> to vector<2x8x8xf32>
    %305 = arith.mulf %301, %304 : vector<2x8x8xf32>
    %306 = arith.addf %295, %305 : vector<2x8x8xf32>
    %307 = vector.extract_strided_slice %6 {offsets = [0, 0, 27], sizes = [2, 8, 1], strides = [1, 1, 1]} : vector<2x8x32xf32> to vector<2x8x1xf32>
    %308 = vector.extract_strided_slice %7 {offsets = [0, 27, 0], sizes = [2, 1, 8], strides = [1, 1, 1]} : vector<2x32x8xf32> to vector<2x1x8xf32>
    %309 = vector.broadcast %307 : vector<2x8x1xf32> to vector<2x8x8xf32>
    %310 = vector.broadcast %308 : vector<2x1x8xf32> to vector<2x8x8xf32>
    %311 = arith.addf %309, %310 : vector<2x8x8xf32>
    %312 = math.tanh %311 : vector<2x8x8xf32>
    %313 = vector.extract_strided_slice %8 {offsets = [0, 27], sizes = [1, 1], strides = [1, 1]} : vector<1x32xf32> to vector<1x1xf32>
    %314 = vector.shape_cast %313 : vector<1x1xf32> to vector<1x1x1xf32>
    %315 = vector.broadcast %314 : vector<1x1x1xf32> to vector<2x8x8xf32>
    %316 = arith.mulf %312, %315 : vector<2x8x8xf32>
    %317 = arith.addf %306, %316 : vector<2x8x8xf32>
    %318 = vector.extract_strided_slice %6 {offsets = [0, 0, 28], sizes = [2, 8, 1], strides = [1, 1, 1]} : vector<2x8x32xf32> to vector<2x8x1xf32>
    %319 = vector.extract_strided_slice %7 {offsets = [0, 28, 0], sizes = [2, 1, 8], strides = [1, 1, 1]} : vector<2x32x8xf32> to vector<2x1x8xf32>
    %320 = vector.broadcast %318 : vector<2x8x1xf32> to vector<2x8x8xf32>
    %321 = vector.broadcast %319 : vector<2x1x8xf32> to vector<2x8x8xf32>
    %322 = arith.addf %320, %321 : vector<2x8x8xf32>
    %323 = math.tanh %322 : vector<2x8x8xf32>
    %324 = vector.extract_strided_slice %8 {offsets = [0, 28], sizes = [1, 1], strides = [1, 1]} : vector<1x32xf32> to vector<1x1xf32>
    %325 = vector.shape_cast %324 : vector<1x1xf32> to vector<1x1x1xf32>
    %326 = vector.broadcast %325 : vector<1x1x1xf32> to vector<2x8x8xf32>
    %327 = arith.mulf %323, %326 : vector<2x8x8xf32>
    %328 = arith.addf %317, %327 : vector<2x8x8xf32>
    %329 = vector.extract_strided_slice %6 {offsets = [0, 0, 29], sizes = [2, 8, 1], strides = [1, 1, 1]} : vector<2x8x32xf32> to vector<2x8x1xf32>
    %330 = vector.extract_strided_slice %7 {offsets = [0, 29, 0], sizes = [2, 1, 8], strides = [1, 1, 1]} : vector<2x32x8xf32> to vector<2x1x8xf32>
    %331 = vector.broadcast %329 : vector<2x8x1xf32> to vector<2x8x8xf32>
    %332 = vector.broadcast %330 : vector<2x1x8xf32> to vector<2x8x8xf32>
    %333 = arith.addf %331, %332 : vector<2x8x8xf32>
    %334 = math.tanh %333 : vector<2x8x8xf32>
    %335 = vector.extract_strided_slice %8 {offsets = [0, 29], sizes = [1, 1], strides = [1, 1]} : vector<1x32xf32> to vector<1x1xf32>
    %336 = vector.shape_cast %335 : vector<1x1xf32> to vector<1x1x1xf32>
    %337 = vector.broadcast %336 : vector<1x1x1xf32> to vector<2x8x8xf32>
    %338 = arith.mulf %334, %337 : vector<2x8x8xf32>
    %339 = arith.addf %328, %338 : vector<2x8x8xf32>
    %340 = vector.extract_strided_slice %6 {offsets = [0, 0, 30], sizes = [2, 8, 1], strides = [1, 1, 1]} : vector<2x8x32xf32> to vector<2x8x1xf32>
    %341 = vector.extract_strided_slice %7 {offsets = [0, 30, 0], sizes = [2, 1, 8], strides = [1, 1, 1]} : vector<2x32x8xf32> to vector<2x1x8xf32>
    %342 = vector.broadcast %340 : vector<2x8x1xf32> to vector<2x8x8xf32>
    %343 = vector.broadcast %341 : vector<2x1x8xf32> to vector<2x8x8xf32>
    %344 = arith.addf %342, %343 : vector<2x8x8xf32>
    %345 = math.tanh %344 : vector<2x8x8xf32>
    %346 = vector.extract_strided_slice %8 {offsets = [0, 30], sizes = [1, 1], strides = [1, 1]} : vector<1x32xf32> to vector<1x1xf32>
    %347 = vector.shape_cast %346 : vector<1x1xf32> to vector<1x1x1xf32>
    %348 = vector.broadcast %347 : vector<1x1x1xf32> to vector<2x8x8xf32>
    %349 = arith.mulf %345, %348 : vector<2x8x8xf32>
    %350 = arith.addf %339, %349 : vector<2x8x8xf32>
    %351 = vector.extract_strided_slice %6 {offsets = [0, 0, 31], sizes = [2, 8, 1], strides = [1, 1, 1]} : vector<2x8x32xf32> to vector<2x8x1xf32>
    %352 = vector.extract_strided_slice %7 {offsets = [0, 31, 0], sizes = [2, 1, 8], strides = [1, 1, 1]} : vector<2x32x8xf32> to vector<2x1x8xf32>
    %353 = vector.broadcast %351 : vector<2x8x1xf32> to vector<2x8x8xf32>
    %354 = vector.broadcast %352 : vector<2x1x8xf32> to vector<2x8x8xf32>
    %355 = arith.addf %353, %354 : vector<2x8x8xf32>
    %356 = math.tanh %355 : vector<2x8x8xf32>
    %357 = vector.extract_strided_slice %8 {offsets = [0, 31], sizes = [1, 1], strides = [1, 1]} : vector<1x32xf32> to vector<1x1xf32>
    %358 = vector.shape_cast %357 : vector<1x1xf32> to vector<1x1x1xf32>
    %359 = vector.broadcast %358 : vector<1x1x1xf32> to vector<2x8x8xf32>
    %360 = arith.mulf %356, %359 : vector<2x8x8xf32>
    %361 = arith.addf %350, %360 : vector<2x8x8xf32>
    %362 = vector.broadcast %5 : vector<1x8x8xf32> to vector<2x8x8xf32>
    %363 = arith.addf %361, %362 : vector<2x8x8xf32>
    %c0_14 = arith.constant 0 : index
    %c0_15 = arith.constant 0 : index
    %c0_16 = arith.constant 0 : index
    %364 = vector.load %arg9[%c0_14, %c0_15, %c0_16] : memref<2x8x1xf32, #tpu.memory_space<vmem>>, vector<2x8x1xf32>
    %cst_17 = arith.constant dense<0xFF800000> : vector<2x8xf32>
    %365 = vector.multi_reduction <maximumf>, %363, %cst_17 [2] : vector<2x8x8xf32> to vector<2x8xf32>
    %366 = vector.shape_cast %365 : vector<2x8xf32> to vector<2x8x1xf32>
    %367 = arith.maximumf %364, %366 : vector<2x8x1xf32>
    %368 = arith.subf %364, %367 : vector<2x8x1xf32>
    %369 = math.exp %368 : vector<2x8x1xf32>
    %370 = vector.broadcast %367 : vector<2x8x1xf32> to vector<2x8x8xf32>
    %371 = arith.subf %363, %370 : vector<2x8x8xf32>
    %372 = math.exp %371 : vector<2x8x8xf32>
    %c0_18 = arith.constant 0 : index
    %c0_19 = arith.constant 0 : index
    %c0_20 = arith.constant 0 : index
    %373 = vector.load %arg10[%c0_18, %c0_19, %c0_20] : memref<2x8x1xf32, #tpu.memory_space<vmem>>, vector<2x8x1xf32>
    %374 = arith.mulf %369, %373 : vector<2x8x1xf32>
    %cst_21 = arith.constant dense<0.000000e+00> : vector<2x8xf32>
    %375 = vector.multi_reduction <add>, %372, %cst_21 [2] : vector<2x8x8xf32> to vector<2x8xf32>
    %376 = vector.shape_cast %375 : vector<2x8xf32> to vector<2x8x1xf32>
    %377 = arith.addf %374, %376 : vector<2x8x1xf32>
    %c0_22 = arith.constant 0 : index
    %c0_23 = arith.constant 0 : index
    %c0_24 = arith.constant 0 : index
    %378 = vector.load %arg10[%c0_22, %c0_23, %c0_24] : memref<2x8x1xf32, #tpu.memory_space<vmem>>, vector<2x8x1xf32>
    tpu.vector_store %arg10[%c0_22, %c0_23, %c0_24], %377 {strides = array<i32>} : memref<2x8x1xf32, #tpu.memory_space<vmem>>, vector<2x8x1xf32>,
    %c0_25 = arith.constant 0 : index
    %c0_26 = arith.constant 0 : index
    %c0_27 = arith.constant 0 : index
    %379 = vector.load %arg11[%c0_25, %c0_26, %c0_27] : memref<2x8x32xf32, #tpu.memory_space<vmem>>, vector<2x8x32xf32>
    %380 = vector.broadcast %369 : vector<2x8x1xf32> to vector<2x8x32xf32>
    %381 = arith.mulf %380, %379 : vector<2x8x32xf32>
    "tpu.trace_start"() <{level = 10 : i32, message = "btk,bkd->btd"}> : () -> ()
    %cst_28 = arith.constant dense<0.000000e+00> : vector<2x8x32xf32>
    %382 = tpu.matmul %372, %3, %cst_28 {dimension_numbers = #tpu.dot_dimension_numbers<[2], [1], [1], [2], [0, 0, 0, 1, 1, 2], [0], [0]>} : vector<2x8x8xf32>, vector<2x8x32xf32>, vector<2x8x32xf32> -> vector<2x8x32xf32>
    "tpu.trace_stop"() : () -> ()
    %383 = arith.addf %381, %382 : vector<2x8x32xf32>
    %c0_29 = arith.constant 0 : index
    %c0_30 = arith.constant 0 : index
    %c0_31 = arith.constant 0 : index
    %384 = vector.load %arg11[%c0_29, %c0_30, %c0_31] : memref<2x8x32xf32, #tpu.memory_space<vmem>>, vector<2x8x32xf32>
    tpu.vector_store %arg11[%c0_29, %c0_30, %c0_31], %383 {strides = array<i32>} : memref<2x8x32xf32, #tpu.memory_space<vmem>>, vector<2x8x32xf32>,
    %c0_32 = arith.constant 0 : index
    %c0_33 = arith.constant 0 : index
    %c0_34 = arith.constant 0 : index
    %385 = vector.load %arg9[%c0_32, %c0_33, %c0_34] : memref<2x8x1xf32, #tpu.memory_space<vmem>>, vector<2x8x1xf32>
    tpu.vector_store %arg9[%c0_32, %c0_33, %c0_34], %367 {strides = array<i32>} : memref<2x8x1xf32, #tpu.memory_space<vmem>>, vector<2x8x1xf32>,
    %c0_i32_35 = arith.constant 0 : i32
    %386 = arith.cmpi eq, %arg2, %c0_i32_35 : i32
    %387 = arith.extui %386 : i1 to i32
    %c0_i32_36 = arith.constant 0 : i32
    %388 = arith.cmpi ne, %387, %c0_i32_36 : i32
    scf.if %388 {
      %c0_37 = arith.constant 0 : index
      %c0_38 = arith.constant 0 : index
      %c0_39 = arith.constant 0 : index
      %389 = vector.load %arg10[%c0_37, %c0_38, %c0_39] : memref<2x8x1xf32, #tpu.memory_space<vmem>>, vector<2x8x1xf32>
      %390 = tpu.reciprocal %389 {approx = true} : vector<2x8x1xf32> -> vector<2x8x1xf32>
      %391 = arith.mulf %389, %390 : vector<2x8x1xf32>
      %cst_40 = arith.constant 2.000000e+00 : f32
      %392 = vector.broadcast %cst_40 : f32 to vector<2x8x1xf32>
      %393 = arith.subf %392, %391 : vector<2x8x1xf32>
      %394 = arith.mulf %390, %393 : vector<2x8x1xf32>
      %c0_41 = arith.constant 0 : index
      %c0_42 = arith.constant 0 : index
      %c0_43 = arith.constant 0 : index
      %395 = vector.load %arg11[%c0_41, %c0_42, %c0_43] : memref<2x8x32xf32, #tpu.memory_space<vmem>>, vector<2x8x32xf32>
      %396 = vector.broadcast %394 : vector<2x8x1xf32> to vector<2x8x32xf32>
      %397 = arith.mulf %395, %396 : vector<2x8x32xf32>
      %c0_44 = arith.constant 0 : index
      %c0_45 = arith.constant 0 : index
      %c0_46 = arith.constant 0 : index
      %398 = vector.load %arg8[%c0_44, %c0_45, %c0_46] : memref<2x8x32xf32, #tpu.memory_space<vmem>>, vector<2x8x32xf32>
      tpu.vector_store %arg8[%c0_44, %c0_45, %c0_46], %397 {strides = array<i32>} : memref<2x8x32xf32, #tpu.memory_space<vmem>>, vector<2x8x32xf32>,
    } else {
    }
    return
  }
  func.func @transform_0(%arg0: i32, %arg1: i32, %arg2: i32) -> (i32, i32, i32) {
    %c0_i32 = arith.constant 0 : i32
    %c0_i32_0 = arith.constant 0 : i32
    return %arg0, %arg1, %c0_i32 : i32, i32, i32
  }
  func.func @transform_1(%arg0: i32, %arg1: i32, %arg2: i32) -> (i32, i32, i32) {
    %c0_i32 = arith.constant 0 : i32
    %c0_i32_0 = arith.constant 0 : i32
    return %arg0, %c0_i32, %arg2 : i32, i32, i32
  }
  func.func @transform_2(%arg0: i32, %arg1: i32, %arg2: i32) -> (i32, i32, i32) {
    %c0_i32 = arith.constant 0 : i32
    %c0_i32_0 = arith.constant 0 : i32
    return %arg0, %arg2, %c0_i32 : i32, i32, i32
  }
  func.func @transform_3(%arg0: i32, %arg1: i32, %arg2: i32) -> (i32, i32, i32) {
    %c0_i32 = arith.constant 0 : i32
    %c0_i32_0 = arith.constant 0 : i32
    return %c0_i32, %arg1, %arg2 : i32, i32, i32
  }
  func.func @transform_4(%arg0: i32, %arg1: i32, %arg2: i32) -> (i32, i32) {
    %c0_i32 = arith.constant 0 : i32
    %c0_i32_0 = arith.constant 0 : i32
    %c0_i32_1 = arith.constant 0 : i32
    return %c0_i32, %c0_i32_0 : i32, i32
  }
  func.func @transform_5(%arg0: i32, %arg1: i32, %arg2: i32) -> (i32, i32, i32) {
    %c0_i32 = arith.constant 0 : i32
    %c0_i32_0 = arith.constant 0 : i32
    return %arg0, %arg1, %c0_i32 : i32, i32, i32
  }
}

</mosaic_0001>

<bundles_post_ra>
// kernel: tpu_custom_call.1
= control target key start
LH: loop header
LB: loop body
LE: loop exit
PB: predicated region body
PF: predicated region fallthrough
CT: control target
= control target key end

     0   :  { %v1525_v1 = vmov 1   ;;  %v1526_v2 = vmov 2   ;;  %s2149_s0 = inlined_call_operand.vmem [shape: f32[2,8,32], index: 0, kind: input, shape index: {}]   ;;  %s2150_s1 = inlined_call_operand.vmem [shape: f32[2,32,8], index: 1, kind: input, shape index: {}]   ;;  %s2151_s2 = inlined_call_operand.vmem [shape: f32[2,8,32], index: 2, kind: input, shape index: {}]   ;;  %s2152_s3 = inlined_call_operand.vmem [shape: bf16[1,8,8], index: 3, kind: input, shape index: {}]   ;;  %s2153_s4 = inlined_call_operand.vmem [shape: f32[1,32], index: 4, kind: input, shape index: {}]   ;;  %s2154_s5 = inlined_call_operand.hbm [shape: f32[2,8,32], index: 5, kind: output, shape index: {}]  }
   0x1   :  { %v1596_v0 = vld [vmem:[%s2149_s0] sm:$0xff]  ;;  %1268 = vset.pattern.permute.xlu1 %v1525_v1  ;;  %1269 = vset.pattern.permute.xlu0 %v1526_v2  ;;  %v1603_v3 = vld [vmem:[%s2149_s0 + $0x8] sm:$0xff] }
   0x2   :  { %84 = vperm.xlu1 %1268, %v1596_v0   ;;  %112 = vperm.xlu0 %1269, %v1596_v0  }
   0x3   :  { %10 = vsyncpa [#allocation6], 0  ;;  %v1527_v4 = vmov 3   ;;  %v1528_v5 = vmov 5   ;;  %v1529_v6 = vmov 6   ;;  %v1530_v7 = vmov 4  }
   0x4   :  { %v1531_v8 = vmov 0   ;;  %v1621_v9 = vld [vmem:[%s2153_s4] ss:$0 sm:$0xff]  ;;  %v1532_v10 = vmov 8   ;;  %v1533_v11 = vmov 7   ;;  %v1534_v12 = vmov 9  }
   0x5   :  { %v1535_v13 = vmov 10   ;;  %v1536_v14 = vmov 11   ;;  %v1537_v15 = vmov 12   ;;  %v1538_v16 = vmov 13   ;;  %v1775_v57 = vld [vmem:[%s2150_s1] sm:$0xff] }
   0x6   :  { %88 = vperm.xlu1 %1268, %v1603_v3   ;;  %1272 = vset.pattern.permute.xlu0 %v1527_v4  ;;  %v1539_v17 = vmov 14   ;;  %v1540_v18 = vmov 15   ;;  %v1541_v19 = vmov 16   ;;  %v1542_v20 = vmov 17   ;;  %v1786_v61 = vld [vmem:[%s2150_s1 + $0x20] sm:$0xff] }
   0x7   :  { %144 = vperm.xlu0 %1272, %v1603_v3   ;;  %v1543_v21 = vmov 18   ;;  %v1544_v22 = vmov 19   ;;  %v1545_v23 = vmov 20   ;;  %v1546_v24 = vmov 21  }
   0x8   :  { %v1547_v25 = vmov 22   ;;  %v1548_v26 = vmov 23   ;;  %v1549_v27 = vmov 24   ;;  %v1550_v28 = vmov 25  }
   0x9   :  { %v1551_v29 = vmov 26   ;;  %v1552_v31 = vmov 27   ;;  %v1553_v33 = vmov 28   ;;  %v1554_v35 = vmov 29  }
   0xa   :  { %1270 = vset.pattern.permute.xlu1 %v1526_v2  ;;  %v1555_v37 = vmov 30   ;;  %v1556_v39 = vmov 31   ;;  %v58_v51 = vlaneseq  ;;  %vm955_vm0 = vcmask 64512  }
   0xb   :  { %116 = vperm.xlu1 %1270, %v1603_v3   ;;  %1274 = vset.pattern.permute.xlu0 %v1528_v5  ;;  %vm25_vm1 = vcmask 7168   ;;  %vm1559_vm2 = vmmov 0   ;;  %vm30_vm3 = vcmask 261120  }
   0xc   :  { %196 = vperm.xlu0 %1274, %v1596_v0   ;;  %v59_v54 = vshrl.u32 %v58_v51, 7 }
   0xe   :  { %v1768_v55 = vsub.s32 1, %v59_v54  ;;  %v1777_v58 = vsub.s32 0, %v59_v54  ;;  %v1788_v62 = vsub.s32 2, %v59_v54 }
   0xf   :  { %1271 = vset.pattern.permute.xlu1 %v1527_v4 }
  0x10   :  { %140 = vperm.xlu1 %1271, %v1596_v0   ;;  %1277 = vset.pattern.permute.xlu0 %v1529_v6  ;;  %v94_v60 = vrot.slane %v1775_v57, %v1768_v55  ;;  %v61_v63 = vrot.slane %v1775_v57, %v1777_v58 }
  0x11   :  { %228 = vperm.xlu0 %1277, %v1603_v3  }
  0x14   :  { %1273 = vset.pattern.permute.xlu1 %v1530_v7 }
  0x15   :  { %168 = vperm.xlu1 %1273, %v1596_v0   ;;  %1278 = vset.pattern.permute.xlu0 %v1531_v8 }
  0x16   :  { %50 = vperm.xlu0 %1278, %v1596_v0  }
  0x19   :  { %172 = vperm.xlu1 %1273, %v1603_v3  }
  0x1a   :  { %55 = vperm.xlu0 %1278, %v1603_v3  }
  0x1d   :  { %1275 = vset.pattern.permute.xlu1 %v1528_v5 }
  0x1e   :  { %200 = vperm.xlu1 %1275, %v1603_v3   ;;  %76 = vperm.xlu0 %1278, %v1621_v9  }
  0x22   :  { %1276 = vset.pattern.permute.xlu1 %v1529_v6  ;;  %1282 = vset.pattern.permute.xlu0 %v1532_v10 }
  0x23   :  { %224 = vperm.xlu1 %1276, %v1596_v0   ;;  %284 = vperm.xlu0 %1282, %v1603_v3  }
  0x27   :  { %1279 = vset.pattern.permute.xlu1 %v1533_v11  ;;  %1285 = vset.pattern.permute.xlu0 %v1534_v12 }
  0x28   :  { %252 = vperm.xlu1 %1279, %v1596_v0   ;;  %312 = vperm.xlu0 %1285, %v1603_v3  }
  0x2c   :  { %256 = vperm.xlu1 %1279, %v1603_v3   ;;  %1288 = vset.pattern.permute.xlu0 %v1535_v13 }
  0x2d   :  { %340 = vperm.xlu0 %1288, %v1603_v3  }
  0x30   :  { %1280 = vset.pattern.permute.xlu1 %v1525_v1 }
  0x31   :  { %104 = vperm.xlu1 %1280, %v1621_v9   ;;  %1291 = vset.pattern.permute.xlu0 %v1536_v14 }
  0x32   :  { %368 = vperm.xlu0 %1291, %v1603_v3  }
  0x35   :  { %1281 = vset.pattern.permute.xlu1 %v1532_v10 }
  0x36   :  { %280 = vperm.xlu1 %1281, %v1596_v0   ;;  %1294 = vset.pattern.permute.xlu0 %v1537_v15 }
  0x37   :  { %396 = vperm.xlu0 %1294, %v1603_v3  }
  0x3a   :  { %1283 = vset.pattern.permute.xlu1 %v1526_v2  ;;  %v65_v2 = vrot.slane %v1786_v61, %v1777_v58 }
  0x3b   :  { %132 = vperm.xlu1 %1283, %v1621_v9   ;;  %1297 = vset.pattern.permute.xlu0 %v1538_v16 }
  0x3c   :  { %424 = vperm.xlu0 %1297, %v1603_v3  }
  0x3f   :  { %1284 = vset.pattern.permute.xlu1 %v1534_v12 }
  0x40   :  { %308 = vperm.xlu1 %1284, %v1596_v0   ;;  %1300 = vset.pattern.permute.xlu0 %v1539_v17 }
  0x41   :  { %452 = vperm.xlu0 %1300, %v1603_v3  }
  0x44   :  { %1286 = vset.pattern.permute.xlu1 %v1527_v4  ;;  %v1798_v4 = vsub.s32 3, %v59_v54 }
  0x45   :  { %160 = vperm.xlu1 %1286, %v1621_v9   ;;  %1303 = vset.pattern.permute.xlu0 %v1540_v18 }
  0x46   :  { %480 = vperm.xlu0 %1303, %v1603_v3  }
  0x49   :  { %1287 = vset.pattern.permute.xlu1 %v1535_v13 }
  0x4a   :  { %336 = vperm.xlu1 %1287, %v1596_v0   ;;  %1306 = vset.pattern.permute.xlu0 %v1541_v19 }
  0x4b   :  { %508 = vperm.xlu0 %1306, %v1603_v3  }
  0x4e   :  { %1289 = vset.pattern.permute.xlu1 %v1530_v7  ;;  %v98_v7 = vrot.slane %v1786_v61, %v1768_v55 }
  0x4f   :  { %188 = vperm.xlu1 %1289, %v1621_v9   ;;  %1309 = vset.pattern.permute.xlu0 %v1542_v20 }
  0x50   :  { %536 = vperm.xlu0 %1309, %v1603_v3  }
  0x53   :  { %1290 = vset.pattern.permute.xlu1 %v1536_v14 }
  0x54   :  { %364 = vperm.xlu1 %1290, %v1596_v0   ;;  %1312 = vset.pattern.permute.xlu0 %v1543_v21 }
  0x55   :  { %564 = vperm.xlu0 %1312, %v1603_v3  }
  0x58   :  { %1292 = vset.pattern.permute.xlu1 %v1528_v5 }
  0x59   :  { %216 = vperm.xlu1 %1292, %v1621_v9   ;;  %1315 = vset.pattern.permute.xlu0 %v1544_v22 }
  0x5a   :  { %592 = vperm.xlu0 %1315, %v1603_v3  }
  0x5d   :  { %1293 = vset.pattern.permute.xlu1 %v1537_v15 }
  0x5e   :  { %392 = vperm.xlu1 %1293, %v1596_v0   ;;  %1318 = vset.pattern.permute.xlu0 %v1545_v23 }
  0x5f   :  { %620 = vperm.xlu0 %1318, %v1603_v3  }
  0x62   :  { %1295 = vset.pattern.permute.xlu1 %v1529_v6 }
  0x63   :  { %244 = vperm.xlu1 %1295, %v1621_v9   ;;  %1321 = vset.pattern.permute.xlu0 %v1546_v24 }
  0x64   :  { %648 = vperm.xlu0 %1321, %v1603_v3  }
  0x67   :  { %1296 = vset.pattern.permute.xlu1 %v1538_v16 }
  0x68   :  { %420 = vperm.xlu1 %1296, %v1596_v0   ;;  %1324 = vset.pattern.permute.xlu0 %v1547_v25 }
  0x69   :  { %676 = vperm.xlu0 %1324, %v1603_v3  }
  0x6c   :  { %1298 = vset.pattern.permute.xlu1 %v1533_v11  ;;  %v1807_v11 = vsub.s32 4, %v59_v54 }
  0x6d   :  { %272 = vperm.xlu1 %1298, %v1621_v9   ;;  %1327 = vset.pattern.permute.xlu0 %v1548_v26 }
  0x6e   :  { %704 = vperm.xlu0 %1327, %v1603_v3  }
  0x71   :  { %1299 = vset.pattern.permute.xlu1 %v1539_v17 }
  0x72   :  { %448 = vperm.xlu1 %1299, %v1596_v0   ;;  %1330 = vset.pattern.permute.xlu0 %v1549_v27 }
  0x73   :  { %732 = vperm.xlu0 %1330, %v1603_v3  }
  0x76   :  { %1301 = vset.pattern.permute.xlu1 %v1532_v10  ;;  %v154_v10 = vrot.slane %v1786_v61, %v1798_v4 }
  0x77   :  { %300 = vperm.xlu1 %1301, %v1621_v9   ;;  %1333 = vset.pattern.permute.xlu0 %v1550_v28 }
  0x78   :  { %760 = vperm.xlu0 %1333, %v1603_v3  }
  0x7b   :  { %1302 = vset.pattern.permute.xlu1 %v1540_v18 }
  0x7c   :  { %476 = vperm.xlu1 %1302, %v1596_v0   ;;  %1336 = vset.pattern.permute.xlu0 %v1551_v29 }
  0x7d   :  { %788 = vperm.xlu0 %1336, %v1603_v3  }
  0x80   :  { %1304 = vset.pattern.permute.xlu1 %v1534_v12  ;;  %v1809_v12 = vsub.s32 5, %v59_v54 }
  0x81   :  { %328 = vperm.xlu1 %1304, %v1621_v9   ;;  %v1699_v30 = vpop.permute.xlu1 %84  ;;  %1339 = vset.pattern.permute.xlu0 %v1552_v31  ;;  %v113_v45 = vpop.permute.xlu0 %112 }
  0x82   :  { %816 = vperm.xlu0 %1339, %v1603_v3   ;;  %v99_v6 = vadd.f32 %v94_v60, %v1699_v30  ;;  %v150_v30 = vrot.slane %v1775_v57, %v1798_v4  ;;  %v1823_v60 = vsub.s32 6, %v59_v54 }
  0x84   :  { %1361 = vtanh.f32 %v99_v6  ;;  %v234_v6 = vrot.slane %v1775_v57, %v1823_v60 }
  0x85   :  { %1305 = vset.pattern.permute.xlu1 %v1541_v19  ;;  %v1704_v32 = vpop.permute.xlu1 %88 }
  0x86   :  { %504 = vperm.xlu1 %1305, %v1596_v0   ;;  %1342 = vset.pattern.permute.xlu0 %v1553_v33  ;;  %v145_v47 = vpop.permute.xlu0 %144 }
  0x87   :  { %844 = vperm.xlu0 %1342, %v1603_v3   ;;  %v156_v51 = vadd.f32 %v154_v10, %v145_v47 }
  0x8a   :  { %1307 = vset.pattern.permute.xlu1 %v1535_v13  ;;  %v1710_v34 = vpop.permute.xlu1 %116 }
  0x8b   :  { %356 = vperm.xlu1 %1307, %v1621_v9   ;;  %1345 = vset.pattern.permute.xlu0 %v1554_v35  ;;  %v197_v49 = vpop.permute.xlu0 %196 }
  0x8c   :  { %872 = vperm.xlu0 %1345, %v1603_v3  }
  0x8f   :  { %1308 = vset.pattern.permute.xlu1 %v1542_v20  ;;  %v1716_v36 = vpop.permute.xlu1 %140 }
  0x90   :  { %532 = vperm.xlu1 %1308, %v1596_v0   ;;  %1348 = vset.pattern.permute.xlu0 %v1555_v37  ;;  %v229_v52 = vpop.permute.xlu0 %228 }
  0x91   :  { %900 = vperm.xlu0 %1348, %v1603_v3  }
  0x94   :  { %1310 = vset.pattern.permute.xlu1 %v1536_v14  ;;  %v1722_v38 = vpop.permute.xlu1 %168  ;;  %v126_v14 = vrot.slane %v1786_v61, %v1788_v62 }
  0x95   :  { %384 = vperm.xlu1 %1310, %v1621_v9   ;;  %1351 = vset.pattern.permute.xlu0 %v1556_v39  ;;  %v51_v59 = vpop.permute.xlu0 %50 }
  0x96   :  { %928 = vperm.xlu0 %1351, %v1603_v3   ;;  %v122_v3 = vrot.slane %v1775_v57, %v1788_v62  ;;  %v66_v13 = vadd.f32 %v61_v63, %v51_v59  ;;  %v178_v59 = vrot.slane %v1775_v57, %v1807_v11  ;;  %v182_v63 = vrot.slane %v1786_v61, %v1807_v11 }
  0x98   :  { %v1727_v40 = vpop.permute.xlu1 %172  ;;  %1363 = vtanh.f32 %v66_v13 }
  0x99   :  { %1311 = vset.pattern.permute.xlu1 %v1543_v21  ;;  %v56_v5 = vpop.permute.xlu0 %55 }
  0x9a   :  { %560 = vperm.xlu1 %1311, %v1596_v0   ;;  %1354 = vset.pattern.permute.xlu0 %v1552_v31 }
  0x9b   :  { %832 = vperm.xlu0 %1354, %v1621_v9  }
  0x9d   :  { %v1733_v41 = vpop.permute.xlu1 %200 }
  0x9e   :  { %1313 = vset.pattern.permute.xlu1 %v1537_v15  ;;  %v67_v15 = vadd.f32 %v65_v2, %v56_v5  ;;  %v155_v2 = vadd.f32 %v150_v30, %v1716_v36  ;;  %v1837_v5 = vsub.s32 7, %v59_v54  ;;  %v1362_v54 = vpop.eup %1361 }
  0x9f   :  { %412 = vperm.xlu1 %1313, %v1621_v9   ;;  %1357 = vset.pattern.permute.xlu0 %v1555_v37 }
  0xa0   :  { %916 = vperm.xlu0 %1357, %v1621_v9   ;;  %1365 = vtanh.f32 %v67_v15 }
  0xa2   :  { %v1739_v42 = vpop.permute.xlu1 %224 }
  0xa3   :  { %1314 = vset.pattern.permute.xlu1 %v1544_v22  ;;  %v239_v13 = vadd.f32 %v234_v6, %v1739_v42 }
  0xa4   :  { %588 = vperm.xlu1 %1314, %v1596_v0   ;;  %1359 = vset.pattern.permute.xlu0 %v1531_v8 }
  0xa7   :  { %v1744_v43 = vpop.permute.xlu1 %252 }
  0xa8   :  { %1316 = vset.pattern.permute.xlu1 %v1538_v16 }
  0xa9   :  { %440 = vperm.xlu1 %1316, %v1621_v9  }
  0xab   :  { %v1748_v44 = vpop.permute.xlu1 %256 }
  0xad   :  { %1317 = vset.pattern.permute.xlu1 %v1545_v23 }
  0xae   :  { %616 = vperm.xlu1 %1317, %v1596_v0  }
  0xb0   :  { %v1752_v46 = vpop.permute.xlu1 %104 }
  0xb2   :  { %1319 = vset.pattern.permute.xlu1 %v1539_v17  ;;  %v127_v17 = vadd.f32 %v122_v3, %v113_v45  ;;  %v128_v45 = vadd.f32 %v126_v14, %v1710_v34  ;;  %v210_v3 = vrot.slane %v1786_v61, %v1809_v12  ;;  %v183_v34 = vadd.f32 %v178_v59, %v1722_v38  ;;  %v1364_v14 = vpop.eup %1363  ;;  %v1862_v59 = vld [vmem:[%s2150_s1 + $0x28] sm:$0xff] }
  0xb3   :  { %468 = vperm.xlu1 %1319, %v1621_v9   ;;  %v262_v38 = vrot.slane %v1775_v57, %v1837_v5 }
  0xb4   :  { %1367 = vtanh.f32 %v127_v17 }
  0xb5   :  { %v1756_v48 = vpop.permute.xlu1 %280  ;;  %v267_v17 = vadd.f32 %v262_v38, %v1744_v43 }
  0xb7   :  { %1320 = vset.pattern.permute.xlu1 %v1546_v24 }
  0xb8   :  { %644 = vperm.xlu1 %1320, %v1596_v0  }
  0xba   :  { %v1760_v50 = vpop.permute.xlu1 %132 }
  0xbc   :  { %1322 = vset.pattern.permute.xlu1 %v1540_v18  ;;  %v206_v18 = vrot.slane %v1775_v57, %v1809_v12 }
  0xbd   :  { %496 = vperm.xlu1 %1322, %v1621_v9  }
  0xbf   :  { %v1764_v53 = vpop.permute.xlu1 %308 }
  0xc1   :  { %1323 = vset.pattern.permute.xlu1 %v1547_v25 }
  0xc2   :  { %672 = vperm.xlu1 %1323, %v1596_v0  }
  0xc4   :  { %v1770_v56 = vpop.permute.xlu1 %160 }
  0xc6   :  { %1325 = vset.pattern.permute.xlu1 %v1541_v19  ;;  %v100_v19 = vadd.f32 %v98_v7, %v1704_v32  ;;  %v211_v32 = vadd.f32 %v206_v18, %v197_v49  ;;  %v184_v49 = vadd.f32 %v182_v63, %v1727_v40  ;;  %v212_v7 = vadd.f32 %v210_v3, %v1733_v41  ;;  %v77_v41 = vpop.permute.xlu0 %76 }
  0xc7   :  { %524 = vperm.xlu1 %1325, %v1621_v9   ;;  %v266_v40 = vrot.slane %v1786_v61, %v1837_v5 }
  0xc8   :  { %1369 = vtanh.f32 %v100_v19 }
  0xc9   :  { %v1792_v1 = vpop.permute.xlu1 %336  ;;  %1371 = vtanh.f32 %v156_v51  ;;  %v268_v42 = vadd.f32 %v266_v40, %v1748_v44  ;;  %v1868_v44 = vld [vmem:[%s2150_s1 + $0x8] sm:$0xff] }
  0xca   :  { %1373 = vtanh.f32 %v128_v45 }
  0xcb   :  { %1326 = vset.pattern.permute.xlu1 %v1548_v26  ;;  %1375 = vtanh.f32 %v211_v32 }
  0xcc   :  { %700 = vperm.xlu1 %1326, %v1596_v0   ;;  %1377 = vtanh.f32 %v155_v2  ;;  %v294_v2 = vrot.slane %v1862_v59, %v1777_v58 }
  0xcd   :  { %1379 = vtanh.f32 %v183_v34 }
  0xce   :  { %v1813_v16 = vpop.permute.xlu1 %188  ;;  %1381 = vtanh.f32 %v184_v49 }
  0xd0   :  { %1328 = vset.pattern.permute.xlu1 %v1542_v20  ;;  %v238_v20 = vrot.slane %v1786_v61, %v1823_v60  ;;  %v79_v61 = vmul.f32 %v1364_v14, %v77_v41 }
  0xd1   :  { %552 = vperm.xlu1 %1328, %v1621_v9  }
  0xd2   :  { %v240_v36 = vadd.f32 %v238_v20, %v229_v52  ;;  %v1366_v52 = vpop.eup %1365 }
  0xd3   :  { %v1831_v47 = vpop.permute.xlu1 %364  ;;  %v1368_v15 = vpop.eup %1367  ;;  %v80_v30 = vmul.f32 %v1366_v52, %v77_v41 }
  0xd4   :  { %1383 = vtanh.f32 %v240_v36  ;;  %v1370_v18 = vpop.eup %1369  ;;  %v135_v63 = vmul.f32 %v1368_v15, %v1760_v50 }
  0xd5   :  { %1329 = vset.pattern.permute.xlu1 %v1549_v27  ;;  %1385 = vtanh.f32 %v212_v7  ;;  %v1372_v19 = vpop.eup %1371  ;;  %v108_v51 = vmul.f32 %v1370_v18, %v1752_v46  ;;  %v285_v7 = vpop.permute.xlu0 %284 }
  0xd6   :  { %728 = vperm.xlu1 %1329, %v1596_v0   ;;  %1387 = vtanh.f32 %v239_v13  ;;  %v1374_v43 = vpop.eup %1373  ;;  %v164_v36 = vmul.f32 %v1372_v19, %v1770_v56  ;;  %v296_v15 = vadd.f32 %v294_v2, %v285_v7 }
  0xd7   :  { %v1376_v45 = vpop.eup %1375  ;;  %1389 = vtanh.f32 %v267_v17  ;;  %v110_v49 = vadd.f32 %v108_v51, %v80_v30 }
  0xd8   :  { %v217_v10 = vpop.permute.xlu1 %216  ;;  %v1378_v32 = vpop.eup %1377  ;;  %1391 = vtanh.f32 %v268_v42 }
  0xd9   :  { %v1380_v3 = vpop.eup %1379  ;;  %v163_v6 = vmul.f32 %v1378_v32, %v1770_v56  ;;  %v219_v18 = vmul.f32 %v1376_v45, %v217_v10  ;;  %1393 = vtanh.f32 %v296_v15  ;;  %v322_v45 = vrot.slane %v1862_v59, %v1768_v55 }
  0xda   :  { %1331 = vset.pattern.permute.xlu1 %v1543_v21  ;;  %v107_v21 = vmul.f32 %v1362_v54, %v1752_v46  ;;  %v136_v46 = vmul.f32 %v1374_v43, %v1760_v50  ;;  %v1382_v38 = vpop.eup %1381  ;;  %v290_v54 = vrot.slane %v1868_v44, %v1777_v58  ;;  %v191_v14 = vmul.f32 %v1380_v3, %v1813_v16 }
  0xdb   :  { %580 = vperm.xlu1 %1331, %v1621_v9   ;;  %v192_v52 = vmul.f32 %v1382_v38, %v1813_v16  ;;  %v346_v15 = vrot.slane %v1868_v44, %v1788_v62 }
  0xdc   :  { %v109_v34 = vadd.f32 %v107_v21, %v79_v61  ;;  %v138_v40 = vadd.f32 %v136_v46, %v110_v49  ;;  %v313_v49 = vpop.permute.xlu0 %312 }
  0xdd   :  { %v1853_v57 = vpop.permute.xlu1 %392  ;;  %v324_v7 = vadd.f32 %v322_v45, %v313_v49  ;;  %v402_v49 = vrot.slane %v1868_v44, %v1807_v11 }
  0xde   :  { %v1384_v50 = vpop.eup %1383  ;;  %v137_v13 = vadd.f32 %v135_v63, %v109_v34  ;;  %v166_v56 = vadd.f32 %v164_v36, %v138_v40 }
  0xdf   :  { %1332 = vset.pattern.permute.xlu1 %v1550_v28  ;;  %v1386_v41 = vpop.eup %1385 }
  0xe0   :  { %756 = vperm.xlu1 %1332, %v1596_v0   ;;  %v165_v17 = vadd.f32 %v163_v6, %v137_v13  ;;  %v220_v42 = vmul.f32 %v1386_v41, %v217_v10  ;;  %v1388_v61 = vpop.eup %1387  ;;  %v194_v21 = vadd.f32 %v192_v52, %v166_v56  ;;  %v341_v41 = vpop.permute.xlu0 %340 }
  0xe1   :  { %v1390_v16 = vpop.eup %1389 }
  0xe2   :  { %v245_v20 = vpop.permute.xlu1 %244  ;;  %v193_v30 = vadd.f32 %v191_v14, %v165_v17  ;;  %v222_v46 = vadd.f32 %v220_v42, %v194_v21  ;;  %v1392_v32 = vpop.eup %1391 }
  0xe3   :  { %v247_v51 = vmul.f32 %v1388_v61, %v245_v20  ;;  %v248_v43 = vmul.f32 %v1384_v50, %v245_v20  ;;  %v318_v20 = vrot.slane %v1868_v44, %v1768_v55  ;;  %v1394_v50 = vpop.eup %1393 }
  0xe4   :  { %1334 = vset.pattern.permute.xlu1 %v1544_v22  ;;  %v295_v22 = vadd.f32 %v290_v54, %v1756_v48  ;;  %v221_v63 = vadd.f32 %v219_v18, %v193_v30  ;;  %v351_v18 = vadd.f32 %v346_v15, %v1792_v1 }
  0xe5   :  { %608 = vperm.xlu1 %1334, %v1621_v9   ;;  %v250_v48 = vadd.f32 %v248_v43, %v222_v46  ;;  %v323_v54 = vadd.f32 %v318_v20, %v1764_v53  ;;  %v374_v43 = vrot.slane %v1868_v44, %v1798_v4 }
  0xe6   :  { %1395 = vtanh.f32 %v295_v22  ;;  %v249_v2 = vadd.f32 %v247_v51, %v221_v63  ;;  %v369_v51 = vpop.permute.xlu0 %368 }
  0xe7   :  { %v1882_v19 = vpop.permute.xlu1 %420  ;;  %1397 = vtanh.f32 %v324_v7  ;;  %v407_v7 = vadd.f32 %v402_v49, %v1853_v57 }
  0xe8   :  { %1399 = vtanh.f32 %v323_v54 }
  0xe9   :  { %1335 = vset.pattern.permute.xlu1 %v1551_v29 }
  0xea   :  { %784 = vperm.xlu1 %1335, %v1596_v0  }
  0xec   :  { %v273_v10 = vpop.permute.xlu1 %272 }
  0xed   :  { %v275_v3 = vmul.f32 %v1390_v16, %v273_v10  ;;  %v276_v34 = vmul.f32 %v1392_v32, %v273_v10  ;;  %v379_v32 = vadd.f32 %v374_v43, %v1831_v47 }
  0xee   :  { %1337 = vset.pattern.permute.xlu1 %v1545_v23  ;;  %v350_v23 = vrot.slane %v1862_v59, %v1788_v62 }
  0xef   :  { %v277_v6 = vadd.f32 %v275_v3, %v249_v2  ;;  %v278_v36 = vadd.f32 %v276_v34, %v250_v48  ;;  %636 = vperm.xlu1 %1337, %v1621_v9   ;;  %v397_v34 = vpop.permute.xlu0 %396 }
  0xf0   :  { %v1396_v13 = vpop.eup %1395  ;;  %v352_v17 = vadd.f32 %v350_v23, %v341_v41 }
  0xf1   :  { %v1893_v38 = vpop.permute.xlu1 %448  ;;  %v1398_v42 = vpop.eup %1397 }
  0xf2   :  { %1401 = vtanh.f32 %v352_v17  ;;  %v1400_v61 = vpop.eup %1399 }
  0xf3   :  { %1338 = vset.pattern.permute.xlu1 %v1552_v31  ;;  %1403 = vtanh.f32 %v351_v18 }
  0xf4   :  { %812 = vperm.xlu1 %1338, %v1596_v0  }
  0xf6   :  { %v301_v40 = vpop.permute.xlu1 %300 }
  0xf7   :  { %v303_v14 = vmul.f32 %v1396_v13, %v301_v40  ;;  %v304_v52 = vmul.f32 %v1394_v50, %v301_v40 }
  0xf8   :  { %1340 = vset.pattern.permute.xlu1 %v1546_v24  ;;  %v378_v24 = vrot.slane %v1862_v59, %v1798_v4 }
  0xf9   :  { %v305_v53 = vadd.f32 %v303_v14, %v277_v6  ;;  %v306_v31 = vadd.f32 %v304_v52, %v278_v36  ;;  %664 = vperm.xlu1 %1340, %v1621_v9   ;;  %v425_v14 = vpop.permute.xlu0 %424  ;;  %v430_v52 = vrot.slane %v1868_v44, %v1809_v12 }
  0xfa   :  { %v380_v63 = vadd.f32 %v378_v24, %v369_v51  ;;  %v458_v24 = vrot.slane %v1868_v44, %v1823_v60 }
  0xfb   :  { %v1904_v56 = vpop.permute.xlu1 %476 }
  0xfc   :  { %v1402_v10 = vpop.eup %1401  ;;  %1405 = vtanh.f32 %v380_v63  ;;  %v463_v51 = vadd.f32 %v458_v24, %v1893_v38 }
  0xfd   :  { %1341 = vset.pattern.permute.xlu1 %v1553_v33  ;;  %v1404_v45 = vpop.eup %1403  ;;  %1407 = vtanh.f32 %v379_v32 }
  0xfe   :  { %840 = vperm.xlu1 %1341, %v1596_v0  }
 0x100   :  { %v329_v22 = vpop.permute.xlu1 %328 }
 0x101   :  { %v331_v30 = vmul.f32 %v1400_v61, %v329_v22  ;;  %v332_v21 = vmul.f32 %v1398_v42, %v329_v22  ;;  %v453_v22 = vpop.permute.xlu0 %452 }
 0x102   :  { %1343 = vset.pattern.permute.xlu1 %v1547_v25  ;;  %v406_v25 = vrot.slane %v1862_v59, %v1807_v11 }
 0x103   :  { %v333_v1 = vadd.f32 %v331_v30, %v305_v53  ;;  %v334_v16 = vadd.f32 %v332_v21, %v306_v31  ;;  %692 = vperm.xlu1 %1343, %v1621_v9   ;;  %v435_v53 = vadd.f32 %v430_v52, %v1882_v19 }
 0x104   :  { %v408_v6 = vadd.f32 %v406_v25, %v397_v34 }
 0x105   :  { %v1915_v46 = vpop.permute.xlu1 %504 }
 0x106   :  { %v1406_v54 = vpop.eup %1405  ;;  %1409 = vtanh.f32 %v408_v6 }
 0x107   :  { %1344 = vset.pattern.permute.xlu1 %v1554_v35  ;;  %v1408_v50 = vpop.eup %1407  ;;  %1411 = vtanh.f32 %v407_v7 }
 0x108   :  { %868 = vperm.xlu1 %1344, %v1596_v0  }
 0x10a   :  { %v357_v2 = vpop.permute.xlu1 %356 }
 0x10b   :  { %v359_v48 = vmul.f32 %v1404_v45, %v357_v2  ;;  %v360_v3 = vmul.f32 %v1402_v10, %v357_v2  ;;  %v481_v10 = vpop.permute.xlu0 %480  ;;  %v486_v45 = vrot.slane %v1868_v44, %v1837_v5 }
 0x10c   :  { %1346 = vset.pattern.permute.xlu1 %v1548_v26  ;;  %v434_v26 = vrot.slane %v1862_v59, %v1809_v12 }
 0x10d   :  { %v361_v47 = vadd.f32 %v359_v48, %v333_v1  ;;  %v362_v20 = vadd.f32 %v360_v3, %v334_v16  ;;  %720 = vperm.xlu1 %1346, %v1621_v9   ;;  %v491_v48 = vadd.f32 %v486_v45, %v1904_v56 }
 0x10e   :  { %v436_v41 = vadd.f32 %v434_v26, %v425_v14 }
 0x10f   :  { %v1926_v36 = vpop.permute.xlu1 %532 }
 0x110   :  { %v1410_v31 = vpop.eup %1409  ;;  %1413 = vtanh.f32 %v436_v41 }
 0x111   :  { %1347 = vset.pattern.permute.xlu1 %v1555_v37  ;;  %v1412_v17 = vpop.eup %1411  ;;  %1415 = vtanh.f32 %v435_v53 }
 0x112   :  { %896 = vperm.xlu1 %1347, %v1596_v0  }
 0x114   :  { %v385_v13 = vpop.permute.xlu1 %384 }
 0x115   :  { %v387_v40 = vmul.f32 %v1408_v50, %v385_v13  ;;  %v388_v23 = vmul.f32 %v1406_v54, %v385_v13 }
 0x116   :  { %1349 = vset.pattern.permute.xlu1 %v1549_v27  ;;  %v462_v27 = vrot.slane %v1862_v59, %v1823_v60 }
 0x117   :  { %v389_v57 = vadd.f32 %v387_v40, %v361_v47  ;;  %v390_v37 = vadd.f32 %v388_v23, %v362_v20  ;;  %748 = vperm.xlu1 %1349, %v1621_v9  }
 0x118   :  { %v464_v21 = vadd.f32 %v462_v27, %v453_v22 }
 0x119   :  { %v1937_v15 = vpop.permute.xlu1 %560 }
 0x11a   :  { %v1414_v43 = vpop.eup %1413  ;;  %1417 = vtanh.f32 %v464_v21 }
 0x11b   :  { %1350 = vset.pattern.permute.xlu1 %v1556_v39  ;;  %v1416_v1 = vpop.eup %1415  ;;  %1419 = vtanh.f32 %v463_v51 }
 0x11c   :  { %924 = vperm.xlu1 %1350, %v1596_v0  }
 0x11e   :  { %v413_v18 = vpop.permute.xlu1 %412 }
 0x11f   :  { %v415_v42 = vmul.f32 %v1412_v17, %v413_v18  ;;  %v416_v61 = vmul.f32 %v1410_v31, %v413_v18 }
 0x120   :  { %1352 = vset.pattern.permute.xlu1 %v1550_v28  ;;  %v490_v28 = vrot.slane %v1862_v59, %v1837_v5  ;;  %v1965_v59 = vld [vmem:[%s2150_s1 + $0x10] sm:$0xff] }
 0x121   :  { %v417_v19 = vadd.f32 %v415_v42, %v389_v57  ;;  %v418_v30 = vadd.f32 %v416_v61, %v390_v37  ;;  %776 = vperm.xlu1 %1352, %v1621_v9   ;;  %v514_v47 = vrot.slane %v1965_v59, %v1777_v58  ;;  %v542_v40 = vrot.slane %v1965_v59, %v1768_v55  ;;  %v509_v37 = vpop.permute.xlu0 %508 }
 0x122   :  { %v492_v2 = vadd.f32 %v490_v28, %v481_v10  ;;  %v570_v57 = vrot.slane %v1965_v59, %v1788_v62  ;;  %v598_v42 = vrot.slane %v1965_v59, %v1798_v4 }
 0x123   :  { %v1948_v0 = vpop.permute.xlu1 %588  ;;  %v519_v6 = vadd.f32 %v514_v47, %v1915_v46 }
 0x124   :  { %v1418_v3 = vpop.eup %1417  ;;  %1421 = vtanh.f32 %v492_v2  ;;  %v575_v31 = vadd.f32 %v570_v57, %v1937_v15 }
 0x125   :  { %1353 = vset.pattern.permute.xlu1 %v1551_v29  ;;  %1423 = vtanh.f32 %v491_v48  ;;  %v537_v17 = vpop.permute.xlu0 %536 }
 0x126   :  { %804 = vperm.xlu1 %1353, %v1621_v9   ;;  %1425 = vtanh.f32 %v519_v6  ;;  %v45_v6 = vld [vmem:[%s2150_s1 + $0x30] sm:$0xff] }
 0x128   :  { %v441_v16 = vpop.permute.xlu1 %440 }
 0x129   :  { %v443_v63 = vmul.f32 %v1416_v1, %v441_v16  ;;  %v444_v32 = vmul.f32 %v1414_v43, %v441_v16  ;;  %v565_v61 = vpop.permute.xlu0 %564  ;;  %v626_v43 = vrot.slane %v1965_v59, %v1807_v11 }
 0x12a   :  { %1355 = vset.pattern.permute.xlu1 %v1553_v33  ;;  %v1420_v33 = vpop.eup %1419 }
 0x12b   :  { %v445_v38 = vadd.f32 %v443_v63, %v417_v19  ;;  %v446_v29 = vadd.f32 %v444_v32, %v418_v30  ;;  %860 = vperm.xlu1 %1355, %v1621_v9   ;;  %v603_v19 = vadd.f32 %v598_v42, %v1948_v0  ;;  %v658_v42 = vrot.slane %v45_v6, %v1809_v12 }
 0x12d   :  { %v617_v25 = vpop.permute.xlu1 %616  ;;  %v593_v30 = vpop.permute.xlu0 %592 }
 0x12e   :  { %v1422_v7 = vpop.eup %1421  ;;  %v631_v63 = vadd.f32 %v626_v43, %v617_v25  ;;  %v2047_v43 = vld [vmem:[%s2150_s1 + $0x18] sm:$0xff] }
 0x12f   :  { %1356 = vset.pattern.permute.xlu1 %v1554_v35  ;;  %v1424_v54 = vpop.eup %1423 }
 0x130   :  { %888 = vperm.xlu1 %1356, %v1621_v9   ;;  %v1426_v52 = vpop.eup %1425 }
 0x131   :  { %v621_v16 = vpop.permute.xlu0 %620 }
 0x132   :  { %v469_v44 = vpop.permute.xlu1 %468 }
 0x133   :  { %v471_v34 = vmul.f32 %v1420_v33, %v469_v44  ;;  %v472_v49 = vmul.f32 %v1418_v3, %v469_v44 }
 0x134   :  { %1358 = vset.pattern.permute.xlu1 %v1556_v39 }
 0x135   :  { %v473_v35 = vadd.f32 %v471_v34, %v445_v38  ;;  %v474_v56 = vadd.f32 %v472_v49, %v446_v29  ;;  %944 = vperm.xlu1 %1358, %v1621_v9   ;;  %v547_v9 = vadd.f32 %v542_v40, %v1926_v36  ;;  %v649_v0 = vpop.permute.xlu0 %648  ;;  %v654_v38 = vrot.slane %v1965_v59, %v1809_v12 }
 0x137   :  { %v645_v20 = vpop.permute.xlu1 %644  ;;  %1427 = vtanh.f32 %v547_v9  ;;  %v574_v9 = vrot.slane %v45_v6, %v1788_v62 }
 0x138   :  { %1429 = vtanh.f32 %v575_v31  ;;  %v659_v48 = vadd.f32 %v654_v38, %v645_v20  ;;  %v630_v31 = vrot.slane %v45_v6, %v1807_v11  ;;  %v738_v38 = vrot.slane %v2047_v43, %v1777_v58 }
 0x139   :  { %1360 = vset.pattern.permute.xlu1 %v1531_v8  ;;  %1431 = vtanh.f32 %v603_v19  ;;  %v677_v3 = vpop.permute.xlu0 %676 }
 0x13a   :  { %1433 = vtanh.f32 %v631_v63 }
 0x13b   :  { %1435 = vtanh.f32 %v659_v48 }
 0x13c   :  { %v497_v50 = vpop.permute.xlu1 %496 }
 0x13d   :  { %v499_v13 = vmul.f32 %v1424_v54, %v497_v50  ;;  %v500_v26 = vmul.f32 %v1422_v7, %v497_v50  ;;  %v705_v34 = vpop.permute.xlu0 %704  ;;  %v518_v54 = vrot.slane %v45_v6, %v1777_v58 }
 0x13f   :  { %v501_v23 = vadd.f32 %v499_v13, %v473_v35  ;;  %v1975_v39 = vadd.f32 %v500_v26, %v474_v56  ;;  %v546_v13 = vrot.slane %v45_v6, %v1768_v55 }
 0x141   :  { %v1977_v14 = vpop.permute.xlu1 %672  ;;  %v1428_v18 = vpop.eup %1427 }
 0x142   :  { %v1430_v21 = vpop.eup %1429  ;;  %v733_v35 = vpop.permute.xlu0 %732 }
 0x143   :  { %v1432_v32 = vpop.eup %1431 }
 0x144   :  { %v1434_v33 = vpop.eup %1433 }
 0x145   :  { %v1436_v56 = vpop.eup %1435 }
 0x146   :  { %v1980_v46 = vpop.permute.xlu1 %524  ;;  %v761_v26 = vpop.permute.xlu0 %760 }
 0x147   :  { %v527_v8 = vmul.f32 %v1426_v52, %v1980_v46  ;;  %v548_v52 = vadd.f32 %v546_v13, %v537_v17  ;;  %v682_v17 = vrot.slane %v1965_v59, %v1823_v60 }
 0x149   :  { %v529_v41 = vadd.f32 %v527_v8, %v501_v23  ;;  %v520_v23 = vadd.f32 %v518_v54, %v509_v37  ;;  %v602_v8 = vrot.slane %v45_v6, %v1798_v4  ;;  %v686_v37 = vrot.slane %v45_v6, %v1823_v60 }
 0x14a   :  { %v687_v63 = vadd.f32 %v682_v17, %v1977_v14  ;;  %v766_v14 = vrot.slane %v2047_v43, %v1768_v55 }
 0x14b   :  { %v1985_v53 = vpop.permute.xlu1 %700  ;;  %1437 = vtanh.f32 %v520_v23  ;;  %v822_v23 = vrot.slane %v2047_v43, %v1798_v4 }
 0x14c   :  { %1439 = vtanh.f32 %v548_v52 }
 0x150   :  { %v1988_v27 = vpop.permute.xlu1 %552 }
 0x151   :  { %v555_v36 = vmul.f32 %v1428_v18, %v1988_v27  ;;  %v789_v18 = vpop.permute.xlu0 %788 }
 0x153   :  { %v557_v22 = vadd.f32 %v555_v36, %v529_v41  ;;  %v576_v41 = vadd.f32 %v574_v9, %v565_v61  ;;  %v604_v36 = vadd.f32 %v602_v8, %v593_v30  ;;  %v714_v61 = vrot.slane %v45_v6, %v1837_v5 }
 0x155   :  { %v1993_v24 = vpop.permute.xlu1 %728  ;;  %1441 = vtanh.f32 %v576_v41  ;;  %v817_v30 = vpop.permute.xlu0 %816 }
 0x156   :  { %1443 = vtanh.f32 %v604_v36  ;;  %v743_v6 = vadd.f32 %v738_v38, %v1993_v24 }
 0x15a   :  { %v1996_v15 = vpop.permute.xlu1 %580 }
 0x15b   :  { %v583_v51 = vmul.f32 %v1430_v21, %v1996_v15  ;;  %v660_v21 = vadd.f32 %v658_v42, %v649_v0 }
 0x15d   :  { %v585_v1 = vadd.f32 %v583_v51, %v557_v22  ;;  %v632_v22 = vadd.f32 %v630_v31, %v621_v16  ;;  %v2042_v51 = vld [vmem:[%s2150_s1 + $0x38] sm:$0xff]  ;;  %v688_v16 = vadd.f32 %v686_v37, %v677_v3  ;;  %v845_v3 = vpop.permute.xlu0 %844  ;;  %v850_v37 = vrot.slane %v2047_v43, %v1807_v11 }
 0x15e   :  { %v770_v48 = vrot.slane %v2042_v51, %v1768_v55  ;;  %v826_v13 = vrot.slane %v2042_v51, %v1798_v4  ;;  %v882_v41 = vrot.slane %v2042_v51, %v1809_v12 }
 0x15f   :  { %v2001_v28 = vpop.permute.xlu1 %756  ;;  %1445 = vtanh.f32 %v632_v22 }
 0x160   :  { %1447 = vtanh.f32 %v660_v21  ;;  %v771_v55 = vadd.f32 %v766_v14, %v2001_v28  ;;  %v828_v36 = vadd.f32 %v826_v13, %v817_v30  ;;  %v910_v30 = vrot.slane %v2042_v51, %v1823_v60 }
 0x161   :  { %1449 = vtanh.f32 %v688_v16  ;;  %v873_v28 = vpop.permute.xlu0 %872 }
 0x162   :  { %1451 = vtanh.f32 %v687_v63  ;;  %v878_v63 = vrot.slane %v2047_v43, %v1809_v12  ;;  %v938_v12 = vrot.slane %v2042_v51, %v1837_v5 }
 0x164   :  { %v2003_v10 = vpop.permute.xlu1 %608 }
 0x165   :  { %v611_v45 = vmul.f32 %v1432_v32, %v2003_v10  ;;  %v742_v32 = vrot.slane %v2042_v51, %v1777_v58 }
 0x167   :  { %v613_v29 = vadd.f32 %v611_v45, %v585_v1  ;;  %v710_v1 = vrot.slane %v1965_v59, %v1837_v5  ;;  %v1438_v45 = vpop.eup %1437 }
 0x169   :  { %v2008_v2 = vpop.permute.xlu1 %784  ;;  %v715_v59 = vadd.f32 %v710_v1, %v1985_v53  ;;  %v798_v53 = vrot.slane %v2042_v51, %v1788_v62  ;;  %v901_v1 = vpop.permute.xlu0 %900 }
 0x16e   :  { %v2010_v44 = vpop.permute.xlu1 %636 }
 0x16f   :  { %v639_v25 = vmul.f32 %v1434_v33, %v2010_v44  ;;  %v1440_v33 = vpop.eup %1439 }
 0x171   :  { %v641_v49 = vadd.f32 %v639_v25, %v613_v29  ;;  %v716_v29 = vadd.f32 %v714_v61, %v705_v34  ;;  %v528_v25 = vmul.f32 %v1438_v45, %v1980_v46  ;;  %v556_v34 = vmul.f32 %v1440_v33, %v1988_v27 }
 0x172   :  { %v794_v46 = vrot.slane %v2047_v43, %v1788_v62  ;;  %v884_v61 = vadd.f32 %v882_v41, %v873_v28  ;;  %v906_v45 = vrot.slane %v2047_v43, %v1823_v60 }
 0x173   :  { %v2013_v47 = vpop.permute.xlu1 %812  ;;  %1453 = vtanh.f32 %v716_v29 }
 0x174   :  { %1455 = vtanh.f32 %v715_v59  ;;  %v799_v8 = vadd.f32 %v794_v46, %v2008_v2  ;;  %v827_v4 = vadd.f32 %v822_v23, %v2013_v47 }
 0x178   :  { %v2018_v7 = vpop.permute.xlu1 %664 }
 0x179   :  { %v667_v20 = vmul.f32 %v1436_v56, %v2018_v7  ;;  %v1442_v56 = vpop.eup %1441 }
 0x17a   :  { %v1444_v54 = vpop.eup %1443  ;;  %v584_v24 = vmul.f32 %v1442_v56, %v1996_v15 }
 0x17b   :  { %v2022_v50 = vadd.f32 %v667_v20, %v641_v49  ;;  %v744_v49 = vadd.f32 %v742_v32, %v733_v35  ;;  %v772_v20 = vadd.f32 %v770_v48, %v761_v26  ;;  %v530_v35 = vadd.f32 %v528_v25, %v1975_v39  ;;  %v1446_v27 = vpop.eup %1445 }
 0x17c   :  { %v854_v26 = vrot.slane %v2042_v51, %v1807_v11  ;;  %v612_v62 = vmul.f32 %v1444_v54, %v2003_v10  ;;  %v800_v39 = vadd.f32 %v798_v53, %v789_v18  ;;  %v1448_v15 = vpop.eup %1447  ;;  %v640_v42 = vmul.f32 %v1446_v27, %v2010_v44 }
 0x17d   :  { %v2025_v40 = vpop.permute.xlu1 %840  ;;  %1457 = vtanh.f32 %v744_v49  ;;  %v558_v9 = vadd.f32 %v556_v34, %v530_v35  ;;  %v1450_v22 = vpop.eup %1449  ;;  %v668_v21 = vmul.f32 %v1448_v15, %v2018_v7 }
 0x17e   :  { %1459 = vtanh.f32 %v743_v6  ;;  %v1452_v10 = vpop.eup %1451  ;;  %v856_v17 = vadd.f32 %v854_v26, %v845_v3  ;;  %v855_v7 = vadd.f32 %v850_v37, %v2025_v40  ;;  %v929_v34 = vpop.permute.xlu0 %928 }
 0x17f   :  { %1461 = vtanh.f32 %v772_v20  ;;  %v586_v31 = vadd.f32 %v584_v24, %v558_v9  ;;  %v1454_v2 = vpop.eup %1453  ;;  %v934_v20 = vrot.slane %v2047_v43, %v1837_v5  ;;  %v940_v46 = vadd.f32 %v938_v12, %v929_v34 }
 0x180   :  { %1463 = vtanh.f32 %v771_v55  ;;  %v1456_v32 = vpop.eup %1455 }
 0x181   :  { %v614_v18 = vadd.f32 %v612_v62, %v586_v31  ;;  %1465 = vtanh.f32 %v800_v39 }
 0x182   :  { %v2029_v57 = vpop.permute.xlu1 %692  ;;  %1467 = vtanh.f32 %v799_v8  ;;  %v833_v43 = vpop.permute.xlu0 %832 }
 0x183   :  { %v695_v44 = vmul.f32 %v1452_v10, %v2029_v57  ;;  %1469 = vtanh.f32 %v828_v36  ;;  %v642_v47 = vadd.f32 %v640_v42, %v614_v18  ;;  %v696_v11 = vmul.f32 %v1450_v22, %v2029_v57 }
 0x184   :  { %1471 = vtanh.f32 %v827_v4  ;;  %v912_v57 = vadd.f32 %v910_v30, %v901_v1 }
 0x185   :  { %1473 = vtanh.f32 %v856_v17  ;;  %v670_v29 = vadd.f32 %v668_v21, %v642_v47  ;;  %v697_v14 = vadd.f32 %v695_v44, %v2022_v50 }
 0x186   :  { %1475 = vtanh.f32 %v884_v61  ;;  %v917_v21 = vpop.permute.xlu0 %916 }
 0x187   :  { %v2034_v19 = vpop.permute.xlu1 %868  ;;  %v1458_v38 = vpop.eup %1457  ;;  %v698_v40 = vadd.f32 %v696_v11, %v670_v29  ;;  %1477 = vtanh.f32 %v855_v7  ;;  %v35_v7 = vld [vmem:[%s2152_s3] sm:$0xf] }
 0x188   :  { %v1460_v59 = vpop.eup %1459  ;;  %v883_v25 = vadd.f32 %v878_v63, %v2034_v19  ;;  %1479 = vtanh.f32 %v912_v57  ;;  %v36_v57 = vunpack.c.l.bf16 %v35_v7 }
 0x189   :  { %v1462_v3 = vpop.eup %1461 }
 0x18a   :  { %v1464_v6 = vpop.eup %1463  ;;  %1481 = vtanh.f32 %v883_v25 }
 0x18b   :  { %v1466_v50 = vpop.eup %1465 }
 0x18c   :  { %v2054_v0 = vpop.permute.xlu1 %720  ;;  %v1468_v24 = vpop.eup %1467 }
 0x18d   :  { %v723_v48 = vmul.f32 %v1456_v32, %v2054_v0  ;;  %v724_v33 = vmul.f32 %v1454_v2, %v2054_v0  ;;  %v1470_v26 = vpop.eup %1469 }
 0x18e   :  { %v1472_v5 = vpop.eup %1471  ;;  %v836_v41 = vmul.f32 %v1470_v26, %v833_v43 }
 0x18f   :  { %v725_v53 = vadd.f32 %v723_v48, %v697_v14  ;;  %v726_v54 = vadd.f32 %v724_v33, %v698_v40  ;;  %v1474_v62 = vpop.eup %1473  ;;  %v835_v8 = vmul.f32 %v1472_v5, %v833_v43 }
 0x190   :  { %v1476_v15 = vpop.eup %1475 }
 0x191   :  { %v2065_v58 = vpop.permute.xlu1 %896  ;;  %v1478_v36 = vpop.eup %1477 }
 0x192   :  { %v911_v0 = vadd.f32 %v906_v45, %v2065_v58  ;;  %v1480_v10 = vpop.eup %1479 }
 0x193   :  { %v920_v11 = vmul.f32 %v1480_v10, %v917_v21 }
 0x194   :  { %1483 = vtanh.f32 %v911_v0  ;;  %v1482_v18 = vpop.eup %1481 }
 0x195   :  { %1485 = vtanh.f32 %v940_v46  ;;  %v34_v46 = vld [vmem:[%s2151_s2 + $0x8] sm:$0xff] }
 0x196   :  { %v749_v52 = vpop.permute.xlu1 %748 }
 0x197   :  { %v751_v60 = vmul.f32 %v1460_v59, %v749_v52  ;;  %v752_v49 = vmul.f32 %v1458_v38, %v749_v52 }
 0x199   :  { %v753_v19 = vadd.f32 %v751_v60, %v725_v53  ;;  %v754_v35 = vadd.f32 %v752_v49, %v726_v54  ;;  %v1557_v49 = vmov -inf  }
 0x19a   :  { %27 = vst.msk [vmem:[#allocation2 + $0x8] sm:$0xff] %vm25_vm1, %v1557_v49  ;;  %26 = vst.msk [vmem:[#allocation2] sm:$0xff] %vm25_vm1, %v1557_v49 }
 0x19b   :  { %v925_v16 = vpop.permute.xlu1 %924 }
 0x19c   :  { %v939_v13 = vadd.f32 %v934_v20, %v925_v16 }
 0x19e   :  { %1487 = vtanh.f32 %v939_v13  ;;  %v1484_v17 = vpop.eup %1483 }
 0x19f   :  { %v1486_v16 = vpop.eup %1485  ;;  %v919_v47 = vmul.f32 %v1484_v17, %v917_v21 }
 0x1a0   :  { %v777_v56 = vpop.permute.xlu1 %776 }
 0x1a1   :  { %v779_v51 = vmul.f32 %v1464_v6, %v777_v56  ;;  %v780_v55 = vmul.f32 %v1462_v3, %v777_v56  ;;  %v1558_v56 = vmov 0.0   ;;  %v954_v6 = vld [vmem:[#allocation2 + $0x8] sm:$0xff]  ;;  %v953_v34 = vld [vmem:[#allocation2] sm:$0xff] }
 0x1a2   :  { %1220 = vmatprep.subr.mxu0 %v1558_v56  ;;  %28 = vst.msk [vmem:[#allocation3] sm:$0xff] %vm25_vm1, %v1558_v56  ;;  %29 = vst.msk [vmem:[#allocation3 + $0x8] sm:$0xff] %vm25_vm1, %v1558_v56  ;;  %1225 = vmatprep.subr.mxu1 %v1558_v56 }
 0x1a3   :  { %v781_v23 = vadd.f32 %v779_v51, %v753_v19  ;;  %v782_v58 = vadd.f32 %v780_v55, %v754_v35  ;;  %1222 = vmatprep.mubr.msk.f32.mxu0 %vm1559_vm2, %v1558_v56  ;;  %1226 = vmatpush3.msra.mxu1 %v34_v46  ;;  %31 = vst.msk [vmem:[#allocation4] sm:$0xff] %vm30_vm3, %v1558_v56  ;;  %32 = vst.msk [vmem:[#allocation4 + $0x8] sm:$0xff] %vm30_vm3, %v1558_v56 }
 0x1a4   :  { %1227 = vmatprep.mubr.msk.f32.mxu1 %vm1559_vm2, %v1558_v56 }
 0x1a5   :  { %v805_v27 = vpop.permute.xlu1 %804 }
 0x1a6   :  { %v807_v28 = vmul.f32 %v1468_v24, %v805_v27  ;;  %v808_v9 = vmul.f32 %v1466_v50, %v805_v27  ;;  %v33_v50 = vld [vmem:[%s2151_s2] sm:$0xff]  ;;  %s1560_s2 = smov [#allocation5]  }
 0x1a7   :  { %1221 = vmatpush3.msra.mxu0 %v33_v50  ;;  %s1202_s17 = sshll.u32 %s1560_s2, 4  ;;  %s1203_s17 = int_to_ptr.vmem [resolvable:$true] %s1202_s17 }
 0x1a8   :  { %v809_v39 = vadd.f32 %v807_v28, %v781_v23  ;;  %v810_v52 = vadd.f32 %v808_v9, %v782_v58  ;;  %v1488_v45 = vpop.eup %1487  ;;  %s1501_s18 = scalar_lea.vmem %s1203_s17, 256  ;;  %p1506_p1 = scmp.lt.s32.totalorder %s1203_s17, %s1203_s17 }
 0x1a9   :  { %p1502_p0 = scmp.ne.s32.totalorder %s1203_s17, %s1501_s18  ;;  %p1507_p2 = scmp.lt.s32.totalorder %s1501_s18, %s1501_s18 }
 0x1aa   :  { %v861_v31 = vpop.permute.xlu1 %860  ;;  %v837_v42 = vadd.f32 %v835_v8, %v809_v39  ;;  %v838_v22 = vadd.f32 %v836_v41, %v810_v52  ;;  %v987_v52 = vld [vmem:[#allocation3 + $0x8] sm:$0xff] }
 0x1ab   :  { %v863_v4 = vmul.f32 %v1478_v36, %v861_v31  ;;  %v864_v37 = vmul.f32 %v1474_v62, %v861_v31  ;;  %p1508_p3 = por %p1507_p2, %p1506_p1 }
 0x1ad   :  { %v865_v61 = vadd.f32 %v863_v4, %v837_v42  ;;  %v866_v30 = vadd.f32 %v864_v37, %v838_v22  ;;  %p1509_p4 = pnand %p1508_p3, %p1502_p0 }
 0x1af   :  { %v889_v2 = vpop.permute.xlu1 %888 }
 0x1b0   :  { %v891_v1 = vmul.f32 %v1482_v18, %v889_v2  ;;  %v892_v44 = vmul.f32 %v1476_v15, %v889_v2  ;;  %v986_v15 = vld [vmem:[#allocation3] sm:$0xff] }
 0x1b2   :  { %v893_v63 = vadd.f32 %v891_v1, %v865_v61  ;;  %v894_v32 = vadd.f32 %v892_v44, %v866_v30 }
 0x1b4   :  { %v921_v38 = vadd.f32 %v919_v47, %v893_v63  ;;  %v922_v29 = vadd.f32 %v920_v11, %v894_v32  ;;  %v945_v48 = vpop.permute.xlu1 %944  ;;  %v1001_v11 = vld [vmem:[#allocation4] sm:$0xff] }
 0x1b5   :  { %v947_v33 = vmul.f32 %v1488_v45, %v945_v48  ;;  %v948_v59 = vmul.f32 %v1486_v16, %v945_v48  ;;  %v1002_v16 = vld [vmem:[#allocation4 + $0x8] sm:$0xff] }
 0x1b7   :  { %v949_v12 = vadd.f32 %v947_v33, %v921_v38  ;;  %v950_v14 = vadd.f32 %v948_v59, %v922_v29 }
 0x1b9   :  { %v952_v3 = vadd.f32 %v950_v14, %v36_v57  ;;  %v951_v40 = vadd.f32 %v949_v12, %v36_v57 }
 0x1bb   :  { %v959_v25 = vsel %vm955_vm0, %v952_v3, -inf  ;;  %v956_v60 = vsel %vm955_vm0, %v951_v40, -inf }
 0x1bc   :  { %960 = vmax.xlane.f32.xlu0 %v959_v25  ;;  %957 = vmax.xlane.f32.xlu1 %v956_v60 }
 0x249   :  { %v961_v0 = vpop.xlane.xlu0 %960  ;;  %v958_v20 = vpop.xlane.xlu1 %957 }
 0x24a   :  { %v963_v53 = vmax.f32 %v954_v6, %v961_v0  ;;  %v962_v54 = vmax.f32 %v953_v34, %v958_v20 }
 0x24c   :  { %v965_v51 = vsub.f32 %v954_v6, %v963_v53  ;;  %1167 = vst.msk [vmem:[#allocation2 + $0x8] sm:$0xff] %vm25_vm1, %v963_v53  ;;  %v964_v55 = vsub.f32 %v953_v34, %v962_v54  ;;  %1166 = vst.msk [vmem:[#allocation2] sm:$0xff] %vm25_vm1, %v962_v54  ;;  %977 = vperm.xlu1 %1360, %v963_v53   ;;  %972 = vperm.xlu0 %1359, %v962_v54  }
 0x24e   :  { %v966_v5 = vmul.f32 1.442695, %v964_v55  ;;  %v968_v43 = vmul.f32 1.442695, %v965_v51 }
 0x2cb   :  { %v978_v19 = vpop.permute.xlu1 %977  ;;  %v973_v35 = vpop.permute.xlu0 %972 }
 0x2cc   :  { %v981_v24 = vsub.f32 %v952_v3, %v978_v19  ;;  %v980_v13 = vsub.f32 %v951_v40, %v973_v35 }
 0x2ce   :  { %v984_v27 = vmul.f32 1.442695, %v981_v24  ;;  %v982_v26 = vmul.f32 1.442695, %v980_v13 }
 0x2d0   :  { %1489 = vpow2.f32 %v984_v27 }
 0x2d1   :  { %1491 = vpow2.f32 %v982_v26 }
 0x2d2   :  { %1493 = vpow2.f32 %v966_v5 }
 0x2d3   :  { %1495 = vpow2.f32 %v968_v43 }
 0x2da   :  { %v1490_v23 = vpop.eup %1489 }
 0x2db   :  { %v1492_v58 = vpop.eup %1491  ;;  %1228 = vmatmul.mubr.msk.f32.vlgmr.msra.gmra.mrb[0].mxu1 %vm955_vm0, %v1490_v23  ;;  %v993_v28 = vsel %vm955_vm0, %v1490_v23, 0.0 }
 0x2dc   :  { %1223 = vmatmul.mubr.msk.f32.vlgmr.msra.gmra.mrb[0].mxu0 %vm955_vm0, %v1492_v58  ;;  %994 = vadd.xlane.f32.xlu0 %v993_v28  ;;  %v990_v9 = vsel %vm955_vm0, %v1492_v58, 0.0  ;;  %v1494_v62 = vpop.eup %1493 }
 0x2dd   :  { %991 = vadd.xlane.f32.xlu1 %v990_v9  ;;  %v1496_v39 = vpop.eup %1495  ;;  %v988_v41 = vmul.f32 %v1494_v62, %v986_v15 }
 0x2de   :  { %v989_v8 = vmul.f32 %v1496_v39, %v987_v52 }
 0x2ee   :  { %1005 = vperm.xlu1 %1360, %v1494_v62  }
 0x2f2   :  { %1010 = vperm.xlu1 %1360, %v1496_v39  }
 0x369   :  { %v995_v31 = vpop.xlane.xlu0 %994 }
 0x36a   :  { %v992_v36 = vpop.xlane.xlu1 %991  ;;  %v997_v42 = vadd.f32 %v995_v31, %v989_v8 }
 0x36b   :  { %v996_v22 = vadd.f32 %v992_v36, %v988_v41 }
 0x36c   :  { %1000 = vst.msk [vmem:[#allocation3 + $0x8] sm:$0xff] %vm25_vm1, %v997_v42 }
 0x36d   :  { %999 = vst.msk [vmem:[#allocation3] sm:$0xff] %vm25_vm1, %v996_v22 }
 0x36e   :  { %v1006_v44 = vpop.permute.xlu1 %1005 }
 0x36f   :  { %v1013_v32 = vmul.f32 %v1006_v44, %v1001_v11 }
 0x372   :  { %v1011_v47 = vpop.permute.xlu1 %1010 }
 0x373   :  { %v1172_v4 = vld [vmem:[#allocation3 + $0x8] sm:$0xff]  ;;  %v1014_v63 = vmul.f32 %v1011_v47, %v1002_v16 }
 0x374   :  { %1497 = vrcp.f32 %v1172_v4  ;;  %v1171_v37 = vld [vmem:[#allocation3] sm:$0xff] }
 0x375   :  { %1499 = vrcp.f32 %v1171_v37 }
 0x37e   :  { %v1498_v10 = vpop.eup %1497 }
 0x37f   :  { %v1500_v18 = vpop.eup %1499  ;;  %v1176_v17 = vmul.f32 %v1498_v10, %v1172_v4 }
 0x380   :  { %v1175_v21 = vmul.f32 %v1500_v18, %v1171_v37 }
 0x381   :  { %v1178_v2 = vsub.f32 2.0, %v1176_v17 }
 0x382   :  { %v1177_v61 = vsub.f32 2.0, %v1175_v21 }
 0x383   :  { %v1180_v30 = vmul.f32 %v1498_v10, %v1178_v2 }
 0x384   :  { %v1179_v1 = vmul.f32 %v1500_v18, %v1177_v61 }
 0x385   :  { %1190 = vperm.xlu1 %1360, %v1180_v30  }
 0x386   :  { %1185 = vperm.xlu0 %1359, %v1179_v1  }
 0x3ae   :  { %v1157_v7 = vpop.f32.mrb[0].mxu1 }
 0x3af   :  { %v1084_v45 = vpop.f32.mrb[0].mxu0  ;;  %v1162_v38 = vadd.f32 %v1157_v7, %v1014_v63  ;;  %v1229_v29 = vpop.f32.mrb[1].mxu1 }
 0x3b0   :  { %v1161_v48 = vadd.f32 %v1084_v45, %v1013_v32  ;;  %v1224_v33 = vpop.f32.mrb[1].mxu0 }
 0x3b1   :  { %1165 = vst.msk [vmem:[#allocation4 + $0x8] sm:$0xff] %vm30_vm3, %v1162_v38 }
 0x3b2   :  { %1164 = vst.msk [vmem:[#allocation4] sm:$0xff] %vm30_vm3, %v1161_v48 }
 0x3b8   :  { %v1182_v59 = vld [vmem:[#allocation4 + $0x8] sm:$0xff] }
 0x3b9   :  { %v1181_v14 = vld [vmem:[#allocation4] sm:$0xff] }
 0x404   :  { %v1191_v57 = vpop.permute.xlu1 %1190 }
 0x405   :  { %v1194_v12 = vmul.f32 %v1191_v57, %v1182_v59  ;;  %v1186_v3 = vpop.permute.xlu0 %1185 }
 0x406   :  { %v1193_v40 = vmul.f32 %v1186_v3, %v1181_v14 }
 0x407   :  { %1196 = vst.msk [vmem:[#allocation5 + $0x8] sm:$0xff] %vm30_vm3, %v1194_v12 }
 0x408   :  { %1195 = vst.msk [vmem:[#allocation5] sm:$0xff] %vm30_vm3, %v1193_v40 }
 0x409   :  { %1512 = shalt.err (!%p1509_p4)
}
 0x40a   :  { %s1513_s21 = scalar_lea.hbm %s2154_s5, 256 }
 0x40b   :  { %p1514_p5 = scmp.ne.s32.totalorder %s2154_s5, %s1513_s21  ;;  %p1517_p6 = scmp.lt.u32.totalorder %s1513_s21, %s2154_s5 }
 0x40d   :  { %p1519_p7 = pnand %p1517_p6, %p1514_p5 }
 0x40f   :  { %1522 = shalt.err (!%p1519_p7)
}
 0x410   :  { %s1561_s24 = smov 128   ;;  %s1562_s25 = smov 8  }
 0x411   :  { %1208 = dma.vmem_to_hbm [thread:$0]  %s1203_s17, 256, %s2154_s5, [#allocation6], %s1561_s24, %s1561_s24, %s1562_s25  }
 0x412   :  { %1523 = dma.done.wait [#allocation6], 256  }
 0x413   :  { %1524 = vsyncadd [#allocation6], 4294967040 }
 0x414   :  { %1212 = vsyncpa [#allocation6], 1 }

</bundles_post_ra>
